<compile_context>
chip_gen: v6e
topology: v6e:2x2x1
jax: 0.10.0
libtpu: 0.0.40
codegen_flags: <defaults>
</compile_context>

<pallas_src>
import functools

import numpy as np
import jax
import jax.numpy as jnp
from jax import lax
from jax.experimental import pallas as pl
from jax.experimental.pallas import tpu as pltpu


# ----------------------------------------------------------------------------
# numpy helpers copied from the reference module (parameter construction only)
# ----------------------------------------------------------------------------
def sph2cart(pts_sph):
    pts_sph = np.array(pts_sph)
    r = pts_sph[:, 0]
    lat = pts_sph[:, 1]
    lng = pts_sph[:, 2]
    z = r * np.sin(lat)
    x = r * np.cos(lat) * np.cos(lng)
    y = r * np.cos(lat) * np.sin(lng)
    return np.stack((x, y, z), axis=-1)


def gen_light_xyz(envmap_h, envmap_w, envmap_radius=100.0):
    lat_step_size = np.pi / (envmap_h + 2)
    lng_step_size = 2 * np.pi / (envmap_w + 2)
    lats = np.linspace(np.pi / 2 - lat_step_size, -np.pi / 2 + lat_step_size, envmap_h)
    lngs = np.linspace(np.pi - lng_step_size, -np.pi + lng_step_size, envmap_w)
    lngs, lats = np.meshgrid(lngs, lats)
    rlatlngs = np.dstack((envmap_radius * np.ones_like(lats), lats, lngs))
    rlatlngs = rlatlngs.reshape(-1, 3)
    xyz = sph2cart(rlatlngs).reshape(envmap_h, envmap_w, 3)
    sin_colat = np.sin(np.pi / 2 - lats)
    areas = 4 * np.pi * sin_colat / np.sum(sin_colat)
    return np.array(xyz, dtype=np.float32), np.array(areas, dtype=np.float32)


# ----------------------------------------------------------------------------
# Pallas kernel: MLP (brdf_layer) + BRDF light integration + gamma correction
# ----------------------------------------------------------------------------
GAMMA = 2.4
MIN_GLOSS = 1.0
_CONTRACT_11 = (((1,), (1,)), ((), ()))   # contract dim 1 of lhs with dim 1 of rhs


def _safe_pow(x, p):
    # torch: sqrt_in = relu(where(|x| <= 1e-6, 1e-6, x)); pow(sqrt_in, p)
    x = jnp.where(jnp.abs(x) <= 1e-6, jnp.full_like(x, 1e-6), x)
    x = jnp.maximum(x, 0.0)
    return jnp.power(x, p)


def envmap_kernel(geo_ref, nrm_ref, vd_ref, lp_ref, light_ref,
                  w1_ref, w2_ref, w3_ref, out_ref, *, pow_dtype):
    f32 = jnp.float32

    # --- brdf_layer: FullyFusedMLP (no bias), D -> 64 -> 64 -> 5, ReLU hidden.
    # geo block is row-major [TN, D]; the (1,1) contraction folds the
    # transpose into the MXU and keeps everything feature-major so the point
    # tile stays on the 128-wide lane axis for all downstream EUP work.
    x = geo_ref[...]                                                      # [TN, D]
    h1 = jnp.maximum(
        lax.dot_general(w1_ref[...], x, _CONTRACT_11,
                        preferred_element_type=f32), 0.0)                 # [64, TN]
    h2 = jnp.maximum(jnp.dot(w2_ref[...], h1,
                             preferred_element_type=f32), 0.0)            # [64, TN]
    head = jnp.dot(w3_ref[...], h2, preferred_element_type=f32)           # [5, TN]

    sig = jax.nn.sigmoid(head[0:4, :])                                    # [4, TN]
    k_diffuse = sig[0:3, :]                                               # [3, TN]
    k_specular = sig[3:4, :]                                              # [1, TN]
    glossiness = jax.nn.softplus(head[4:5, :]) + MIN_GLOSS                # [1, TN]

    # --- geometry terms (per-point arrays arrive row-major) ------------------
    n_blk = nrm_ref[...]                                                  # [TN, 3]
    v_blk = -vd_ref[...]                                                  # [TN, 3]  v = -view_dirs
    lp = lp_ref[...]                                                      # [L, 3]   unit light dirs
    lt = light_ref[...]                                                   # [3, L]   light^T
    # NOTE: the reflection vector `r` computed in the PyTorch forward is unused.

    NL = lax.dot_general(lp, n_blk, _CONTRACT_11,
                         preferred_element_type=f32)                      # [L, TN]
    LV = lax.dot_general(lp, v_blk, _CONTRACT_11,
                         preferred_element_type=f32)                      # [L, TN]
    ones13 = jnp.ones((1, 3), f32)
    nv_dot = lax.dot_general(ones13, n_blk * v_blk, _CONTRACT_11,
                             preferred_element_type=f32)                  # [1, TN]
    vv_dot = lax.dot_general(ones13, v_blk * v_blk, _CONTRACT_11,
                             preferred_element_type=f32)                  # [1, TN]

    # diffuse integral right after nl (visibility == 1: no `normal_coarse`)
    nl = jnp.clip(NL, 0.0, 1.1)                                           # [L, TN]
    dif_int = jnp.dot(lt, nl, preferred_element_type=f32)                 # [3, TN]

    # specular: |l| = 1  =>  |l + v|^2 = 1 + 2 l.v + |v|^2.
    # sqrt + divide fused into one rsqrt (EUP is the binding unit here).
    inv_lv = lax.rsqrt(jnp.maximum(1.0 + 2.0 * LV + vv_dot, 1e-10))       # [L, TN]
    nh = jnp.clip((NL + nv_dot) * inv_lv, 0.0, 1.1)                       # [L, TN]
    # nh ** glossiness as exp(g * log(nh)); bf16 on v6e/v7x (bf16 EUP),
    # f32 elsewhere.  glossiness >= 1 guarantees nh == 0 -> 0 cleanly.
    nh_pow = jnp.exp(glossiness.astype(pow_dtype) *
                     jnp.log(nh.astype(pow_dtype)))                       # [L, TN]
    spec_int = jnp.dot(lt.astype(pow_dtype), nh_pow,
                       preferred_element_type=f32)                        # [3, TN]

    diffuse = k_diffuse * dif_int                                         # [3, TN]
    specular = k_specular * spec_int                                      # [3, TN]
    color = jnp.maximum(diffuse + specular, 0.0)

    # packed lane-dense output (rows 0-2 color, 3-5 specular, 6-8 diffuse,
    # 9-11 k_diffuse), written by row slices — no [12, TN] concat temp.
    # Gamma pows kept in f32 (only 9 rows; preserves output precision).
    inv_g = 1.0 / GAMMA
    out_ref[0:3, :] = _safe_pow(color, inv_g)
    out_ref[3:6, :] = _safe_pow(jnp.clip(specular, 0.0, 1.0), inv_g)
    out_ref[6:9, :] = _safe_pow(jnp.clip(diffuse, 0.0, 1.0), inv_g)
    out_ref[9:12, :] = k_diffuse


# ----------------------------------------------------------------------------
# wrapper
# ----------------------------------------------------------------------------
def _round_up(x, m):
    return ((x + m - 1) // m) * m


def _default_pow_dtype():
    # bf16 EUP path only where EUP/VPU are bf16-capable (v6e / v7x); f32 on
    # v5e / unknown chips.
    try:
        kind = jax.devices()[0].device_kind.lower()
    except Exception:
        return jnp.float32
    if any(s in kind for s in ("v6", "v7", "tpu7")):
        return jnp.bfloat16
    return jnp.float32


def envmap_material_forward(geo_feat, normals, view_dirs, params, *,
                            tile_n=1024, pow_dtype=None):
    """Returns (color, specular, diffuse, k_diffuse), each [N, 3] float32."""
    N, D = geo_feat.shape
    if pow_dtype is None:
        pow_dtype = _default_pow_dtype()

    # Big tiles amortize the ~0.35us/grid-step overhead; cap for small N.
    tile = min(int(tile_n), _round_up(N, 128))
    tile = max(128, _round_up(tile, 128))
    n_tiles = (N + tile - 1) // tile
    n_pad = n_tiles * tile
    pad = n_pad - N

    env_map = params["env_map"]               # [H, W, C]
    light_areas = params["light_areas"]       # [H, W, 1]
    lp = params["light_probes"]               # [L, 3] (unit)
    w1, w2, w3 = params["w1"], params["w2"], params["w3"]

    # glue: light = (softplus(env_map) * light_areas).reshape([-1, C])
    light = (jax.nn.softplus(env_map) * light_areas).reshape(-1, env_map.shape[-1])
    if light.shape[-1] == 1:                  # white_light broadcast
        light = jnp.broadcast_to(light, (light.shape[0], 3))
    L = light.shape[0]
    H = w1.shape[1]

    # Only constant-size layout plumbing here (weights / light are tiny).
    # The big per-point arrays are fed row-major — no HBM transpose pass.
    lightT = jnp.asarray(light).T                                     # [3, L]
    w1T, w2T, w3T = w1.T, w2.T, w3.T                                  # [H,D],[H,H],[5,H]

    if pad:
        geo_feat = jnp.pad(geo_feat, ((0, pad), (0, 0)))
        normals = jnp.pad(normals, ((0, pad), (0, 0)))
        view_dirs = jnp.pad(view_dirs, ((0, pad), (0, 0)))

    const = lambda shape: pl.BlockSpec(shape, lambda i: (0, 0))

    flops = int(2 * n_pad * (D * H + H * H + H * 5 + 4 * 3 * L + 12))
    transcendentals = int(n_pad * (3 * L + 30))
    bytes_accessed = int(4 * (n_pad * (D + 6 + 12)
                              + L * 6 + D * H + H * H + H * 5))

    kernel = functools.partial(envmap_kernel, pow_dtype=pow_dtype)

    packed = pl.pallas_call(
        kernel,
        out_shape=jax.ShapeDtypeStruct((12, n_pad), jnp.float32),
        grid_spec=pltpu.PrefetchScalarGridSpec(
            num_scalar_prefetch=0,
            grid=(n_tiles,),
            in_specs=[
                pl.BlockSpec((tile, D), lambda i: (i, 0)),     # geo_feat (row-major)
                pl.BlockSpec((tile, 3), lambda i: (i, 0)),     # normals
                pl.BlockSpec((tile, 3), lambda i: (i, 0)),     # view_dirs
                const((L, 3)),                                 # light_probes
                const((3, L)),                                 # light^T
                const((H, D)),                                 # w1^T
                const((H, H)),                                 # w2^T
                const((5, H)),                                 # w3^T
            ],
            out_specs=pl.BlockSpec((12, tile), lambda i: (0, i)),
        ),
        compiler_params=pltpu.CompilerParams(
            dimension_semantics=("parallel",)),
        cost_estimate=pl.CostEstimate(flops=flops,
                                      transcendentals=transcendentals,
                                      bytes_accessed=bytes_accessed),
    )(geo_feat, normals, view_dirs, lp, lightT, w1T, w2T, w3T)

    # Single transpose of the packed slab, then cheap column slices.
    unpacked = packed[:, :N].T                                        # [N, 12]
    color = unpacked[:, 0:3]
    specular = unpacked[:, 3:6]
    diffuse = unpacked[:, 6:9]
    k_diffuse = unpacked[:, 9:12]
    return color, specular, diffuse, k_diffuse


# ----------------------------------------------------------------------------
# deterministic parameter init (shapes follow the module __init__)
# ----------------------------------------------------------------------------
def init_params(key, input_dim, env_res=8, white_light=False, hidden=64):
    c = 1 if white_light else 3
    k_env, k1, k2, k3 = jax.random.split(key, 4)

    # env_map: xavier_normal_ on [env_res, env_res, c]
    std = np.sqrt(2.0 / (env_res + env_res))
    env_map = std * jax.random.normal(k_env, (env_res, env_res, c), jnp.float32)

    light_probes_np, areas_np = gen_light_xyz(env_res, env_res, 100.0)
    light_probes = jnp.asarray(light_probes_np.reshape(-1, 3))
    light_probes = light_probes / jnp.linalg.norm(light_probes, axis=-1, keepdims=True)
    light_areas = jnp.asarray(areas_np)[..., None]                      # [H, W, 1]

    def xavier(k, fan_in, fan_out):
        s = np.sqrt(2.0 / (fan_in + fan_out))
        return s * jax.random.normal(k, (fan_in, fan_out), jnp.float32)

    return dict(
        env_map=env_map,
        light_probes=light_probes,
        light_areas=light_areas,
        w1=xavier(k1, input_dim, hidden),
        w2=xavier(k2, hidden, hidden),
        w3=xavier(k3, hidden, 5),
    )


if __name__ == "__main__":
    key = jax.random.PRNGKey(0)
    kp, kg, kn, kv = jax.random.split(key, 4)

    N, D, ENV_RES = 256, 32, 8
    params = init_params(kp, input_dim=D, env_res=ENV_RES, white_light=False)

    geo_feat = jax.random.normal(kg, (N, D), jnp.float32)
    normals = jax.random.normal(kn, (N, 3), jnp.float32)
    normals = normals / jnp.linalg.norm(normals, axis=-1, keepdims=True)
    view_dirs = jax.random.normal(kv, (N, 3), jnp.float32)
    view_dirs = view_dirs / jnp.linalg.norm(view_dirs, axis=-1, keepdims=True)

    color, specular, diffuse, k_diffuse = envmap_material_forward(
        geo_feat, normals, view_dirs, params)
    jax.block_until_ready((color, specular, diffuse, k_diffuse))

    assert color.shape == (N, 3) and specular.shape == (N, 3)
    assert diffuse.shape == (N, 3) and k_diffuse.shape == (N, 3)
    assert bool(jnp.all(jnp.isfinite(color)))
    assert bool(jnp.all(jnp.isfinite(specular)))
    assert bool(jnp.all(jnp.isfinite(diffuse)))
    assert bool(jnp.all(jnp.isfinite(k_diffuse)))
    print("KERNEL_OK")
</pallas_src>

<mosaic_0001>
module attributes {stable_mosaic.version = 11 : i64} {
  func.func @envmap_kernel(%arg0: i32, %arg1: memref<256x32xf32, #tpu.memory_space<vmem>>, %arg2: memref<256x3xf32, #tpu.memory_space<vmem>>, %arg3: memref<256x3xf32, #tpu.memory_space<vmem>>, %arg4: memref<64x3xf32, #tpu.memory_space<vmem>>, %arg5: memref<3x64xf32, #tpu.memory_space<vmem>>, %arg6: memref<64x32xf32, #tpu.memory_space<vmem>>, %arg7: memref<64x64xf32, #tpu.memory_space<vmem>>, %arg8: memref<5x64xf32, #tpu.memory_space<vmem>>, %arg9: memref<12x256xf32, #tpu.memory_space<vmem>>) attributes {dimension_semantics = [#tpu.dimension_semantics<parallel>], iteration_bounds = array<i64: 1>, scalar_prefetch = 0 : i64, scratch_operands = 0 : i64, tpu.core_type = #tpu.core_type<tc>, window_params = [{transform_indices = @transform_0, window_bounds = array<i64: 256, 32>}, {transform_indices = @transform_1, window_bounds = array<i64: 256, 3>}, {transform_indices = @transform_2, window_bounds = array<i64: 256, 3>}, {pipeline_mode = #tpu.pipeline_mode<synchronous>, transform_indices = @transform_3, window_bounds = array<i64: 64, 3>}, {pipeline_mode = #tpu.pipeline_mode<synchronous>, transform_indices = @transform_4, window_bounds = array<i64: 3, 64>}, {pipeline_mode = #tpu.pipeline_mode<synchronous>, transform_indices = @transform_5, window_bounds = array<i64: 64, 32>}, {pipeline_mode = #tpu.pipeline_mode<synchronous>, transform_indices = @transform_6, window_bounds = array<i64: 64, 64>}, {pipeline_mode = #tpu.pipeline_mode<synchronous>, transform_indices = @transform_7, window_bounds = array<i64: 5, 64>}, {transform_indices = @transform_8, window_bounds = array<i64: 12, 256>}]} {
    %c0 = arith.constant 0 : index
    %c0_0 = arith.constant 0 : index
    %0 = vector.load %arg1[%c0, %c0_0] : memref<256x32xf32, #tpu.memory_space<vmem>>, vector<256x32xf32>
    %c0_1 = arith.constant 0 : index
    %c0_2 = arith.constant 0 : index
    %1 = vector.load %arg6[%c0_1, %c0_2] : memref<64x32xf32, #tpu.memory_space<vmem>>, vector<64x32xf32>
    %cst = arith.constant dense<0.000000e+00> : vector<64x256xf32>
    %2 = tpu.matmul %1, %0, %cst {dimension_numbers = #tpu.dot_dimension_numbers<[1], [1], [0], [0], [0, 0, 1, 0], [], []>} : vector<64x32xf32>, vector<256x32xf32>, vector<64x256xf32> -> vector<64x256xf32>
    %cst_3 = arith.constant 0.000000e+00 : f32
    %3 = vector.broadcast %cst_3 : f32 to vector<64x256xf32>
    %4 = arith.maximumf %2, %3 : vector<64x256xf32>
    %c0_4 = arith.constant 0 : index
    %c0_5 = arith.constant 0 : index
    %5 = vector.load %arg7[%c0_4, %c0_5] : memref<64x64xf32, #tpu.memory_space<vmem>>, vector<64x64xf32>
    %cst_6 = arith.constant dense<0.000000e+00> : vector<64x256xf32>
    %6 = tpu.matmul %5, %4, %cst_6 {dimension_numbers = #tpu.dot_dimension_numbers<[1], [0], [0], [1], [0, 0, 1, 1], [], []>} : vector<64x64xf32>, vector<64x256xf32>, vector<64x256xf32> -> vector<64x256xf32>
    %cst_7 = arith.constant 0.000000e+00 : f32
    %7 = vector.broadcast %cst_7 : f32 to vector<64x256xf32>
    %8 = arith.maximumf %6, %7 : vector<64x256xf32>
    %c0_8 = arith.constant 0 : index
    %c0_9 = arith.constant 0 : index
    %9 = vector.load %arg8[%c0_8, %c0_9] : memref<5x64xf32, #tpu.memory_space<vmem>>, vector<5x64xf32>
    %cst_10 = arith.constant dense<0.000000e+00> : vector<5x256xf32>
    %10 = tpu.matmul %9, %8, %cst_10 {dimension_numbers = #tpu.dot_dimension_numbers<[1], [0], [0], [1], [0, 0, 1, 1], [], []>} : vector<5x64xf32>, vector<64x256xf32>, vector<5x256xf32> -> vector<5x256xf32>
    %11 = vector.extract_strided_slice %10 {offsets = [0, 0], sizes = [4, 256], strides = [1, 1]} : vector<5x256xf32> to vector<4x256xf32>
    %12 = arith.negf %11 : vector<4x256xf32>
    %13 = math.exp %12 : vector<4x256xf32>
    %cst_11 = arith.constant 1.000000e+00 : f32
    %14 = vector.broadcast %cst_11 : f32 to vector<4x256xf32>
    %15 = arith.addf %14, %13 : vector<4x256xf32>
    %16 = arith.divf %14, %15 : vector<4x256xf32>
    %17 = vector.extract_strided_slice %16 {offsets = [0, 0], sizes = [3, 256], strides = [1, 1]} : vector<4x256xf32> to vector<3x256xf32>
    %18 = vector.extract_strided_slice %16 {offsets = [3, 0], sizes = [1, 256], strides = [1, 1]} : vector<4x256xf32> to vector<1x256xf32>
    %19 = vector.extract_strided_slice %10 {offsets = [4, 0], sizes = [1, 256], strides = [1, 1]} : vector<5x256xf32> to vector<1x256xf32>
    %cst_12 = arith.constant 0.000000e+00 : f32
    %20 = vector.broadcast %cst_12 : f32 to vector<1x256xf32>
    %21 = arith.maximumf %19, %20 : vector<1x256xf32>
    %22 = vector.broadcast %cst_12 : f32 to vector<1x256xf32>
    %23 = arith.subf %19, %22 : vector<1x256xf32>
    %24 = arith.cmpf one, %23, %23 : vector<1x256xf32>
    %25 = vector.broadcast %cst_12 : f32 to vector<1x256xf32>
    %26 = arith.addf %19, %25 : vector<1x256xf32>
    %27 = math.absf %23 : vector<1x256xf32>
    %cst_13 = arith.constant 0.000000e+00 : f32
    %28 = vector.broadcast %cst_13 : f32 to vector<1x256xf32>
    %29 = arith.subf %28, %27 : vector<1x256xf32>
    %30 = math.exp %29 : vector<1x256xf32>
    %31 = math.log1p %30 : vector<1x256xf32>
    %32 = arith.addf %21, %31 : vector<1x256xf32>
    %33 = arith.select %24, %26, %32 : vector<1x256xi1>, vector<1x256xf32>
    %cst_14 = arith.constant 1.000000e+00 : f32
    %34 = vector.broadcast %cst_14 : f32 to vector<1x256xf32>
    %35 = arith.addf %33, %34 : vector<1x256xf32>
    %c0_15 = arith.constant 0 : index
    %c0_16 = arith.constant 0 : index
    %36 = vector.load %arg2[%c0_15, %c0_16] : memref<256x3xf32, #tpu.memory_space<vmem>>, vector<256x3xf32>
    %c0_17 = arith.constant 0 : index
    %c0_18 = arith.constant 0 : index
    %37 = vector.load %arg3[%c0_17, %c0_18] : memref<256x3xf32, #tpu.memory_space<vmem>>, vector<256x3xf32>
    %cst_19 = arith.constant 0.000000e+00 : f32
    %38 = vector.broadcast %cst_19 : f32 to vector<256x3xf32>
    %39 = arith.subf %38, %37 : vector<256x3xf32>
    %c0_20 = arith.constant 0 : index
    %c0_21 = arith.constant 0 : index
    %40 = vector.load %arg4[%c0_20, %c0_21] : memref<64x3xf32, #tpu.memory_space<vmem>>, vector<64x3xf32>
    %c0_22 = arith.constant 0 : index
    %c0_23 = arith.constant 0 : index
    %41 = vector.load %arg5[%c0_22, %c0_23] : memref<3x64xf32, #tpu.memory_space<vmem>>, vector<3x64xf32>
    %cst_24 = arith.constant dense<0.000000e+00> : vector<64x256xf32>
    %42 = tpu.matmul %40, %36, %cst_24 {dimension_numbers = #tpu.dot_dimension_numbers<[1], [1], [0], [0], [0, 0, 1, 0], [], []>} : vector<64x3xf32>, vector<256x3xf32>, vector<64x256xf32> -> vector<64x256xf32>
    %cst_25 = arith.constant dense<0.000000e+00> : vector<64x256xf32>
    %43 = tpu.matmul %40, %39, %cst_25 {dimension_numbers = #tpu.dot_dimension_numbers<[1], [1], [0], [0], [0, 0, 1, 0], [], []>} : vector<64x3xf32>, vector<256x3xf32>, vector<64x256xf32> -> vector<64x256xf32>
    %cst_26 = arith.constant 1.000000e+00 : f32
    %44 = vector.broadcast %cst_26 : f32 to vector<1x3xf32>
    %45 = arith.mulf %36, %39 : vector<256x3xf32>
    %cst_27 = arith.constant dense<0.000000e+00> : vector<1x256xf32>
    %46 = tpu.matmul %44, %45, %cst_27 {dimension_numbers = #tpu.dot_dimension_numbers<[1], [1], [0], [0], [0, 0, 1, 0], [], []>} : vector<1x3xf32>, vector<256x3xf32>, vector<1x256xf32> -> vector<1x256xf32>
    %47 = arith.mulf %39, %39 : vector<256x3xf32>
    %cst_28 = arith.constant dense<0.000000e+00> : vector<1x256xf32>
    %48 = tpu.matmul %44, %47, %cst_28 {dimension_numbers = #tpu.dot_dimension_numbers<[1], [1], [0], [0], [0, 0, 1, 0], [], []>} : vector<1x3xf32>, vector<256x3xf32>, vector<1x256xf32> -> vector<1x256xf32>
    %cst_29 = arith.constant 0.000000e+00 : f32
    %cst_30 = arith.constant 1.100000e+00 : f32
    %49 = vector.broadcast %cst_29 : f32 to vector<64x256xf32>
    %50 = arith.maximumf %49, %42 : vector<64x256xf32>
    %51 = vector.broadcast %cst_30 : f32 to vector<64x256xf32>
    %52 = arith.minimumf %51, %50 : vector<64x256xf32>
    %cst_31 = arith.constant dense<0.000000e+00> : vector<3x256xf32>
    %53 = tpu.matmul %41, %52, %cst_31 {dimension_numbers = #tpu.dot_dimension_numbers<[1], [0], [0], [1], [0, 0, 1, 1], [], []>} : vector<3x64xf32>, vector<64x256xf32>, vector<3x256xf32> -> vector<3x256xf32>
    %cst_32 = arith.constant 2.000000e+00 : f32
    %54 = vector.broadcast %cst_32 : f32 to vector<64x256xf32>
    %55 = arith.mulf %54, %43 : vector<64x256xf32>
    %cst_33 = arith.constant 1.000000e+00 : f32
    %56 = vector.broadcast %cst_33 : f32 to vector<64x256xf32>
    %57 = arith.addf %56, %55 : vector<64x256xf32>
    %58 = vector.broadcast %48 : vector<1x256xf32> to vector<64x256xf32>
    %59 = arith.addf %57, %58 : vector<64x256xf32>
    %cst_34 = arith.constant 1.000000e-10 : f32
    %60 = vector.broadcast %cst_34 : f32 to vector<64x256xf32>
    %61 = arith.maximumf %59, %60 : vector<64x256xf32>
    %62 = math.rsqrt %61 : vector<64x256xf32>
    %63 = vector.broadcast %46 : vector<1x256xf32> to vector<64x256xf32>
    %64 = arith.addf %42, %63 : vector<64x256xf32>
    %65 = arith.mulf %64, %62 : vector<64x256xf32>
    %cst_35 = arith.constant 0.000000e+00 : f32
    %cst_36 = arith.constant 1.100000e+00 : f32
    %66 = vector.broadcast %cst_35 : f32 to vector<64x256xf32>
    %67 = arith.maximumf %66, %65 : vector<64x256xf32>
    %68 = vector.broadcast %cst_36 : f32 to vector<64x256xf32>
    %69 = arith.minimumf %68, %67 : vector<64x256xf32>
    %70 = math.log %69 : vector<64x256xf32>
    %71 = vector.broadcast %35 : vector<1x256xf32> to vector<64x256xf32>
    %72 = arith.mulf %71, %70 : vector<64x256xf32>
    %73 = math.exp %72 : vector<64x256xf32>
    %cst_37 = arith.constant dense<0.000000e+00> : vector<3x256xf32>
    %74 = tpu.matmul %41, %73, %cst_37 {dimension_numbers = #tpu.dot_dimension_numbers<[1], [0], [0], [1], [0, 0, 1, 1], [], []>} : vector<3x64xf32>, vector<64x256xf32>, vector<3x256xf32> -> vector<3x256xf32>
    %75 = arith.mulf %17, %53 : vector<3x256xf32>
    %76 = vector.broadcast %18 : vector<1x256xf32> to vector<3x256xf32>
    %77 = arith.mulf %76, %74 : vector<3x256xf32>
    %78 = arith.addf %75, %77 : vector<3x256xf32>
    %cst_38 = arith.constant 0.000000e+00 : f32
    %79 = vector.broadcast %cst_38 : f32 to vector<3x256xf32>
    %80 = arith.maximumf %78, %79 : vector<3x256xf32>
    %81 = math.absf %80 : vector<3x256xf32>
    %cst_39 = arith.constant 9.99999997E-7 : f32
    %82 = vector.broadcast %cst_39 : f32 to vector<3x256xf32>
    %83 = arith.cmpf ole, %81, %82 : vector<3x256xf32>
    %cst_40 = arith.constant 9.99999997E-7 : f32
    %84 = vector.broadcast %cst_40 : f32 to vector<3x256xf32>
    %85 = arith.select %83, %84, %80 : vector<3x256xi1>, vector<3x256xf32>
    %cst_41 = arith.constant 0.000000e+00 : f32
    %86 = vector.broadcast %cst_41 : f32 to vector<3x256xf32>
    %87 = arith.maximumf %85, %86 : vector<3x256xf32>
    %cst_42 = arith.constant 0.416666657 : f32
    %88 = vector.broadcast %cst_42 : f32 to vector<3x256xf32>
    %89 = math.powf %87, %88 : vector<3x256xf32>
    %c0_43 = arith.constant 0 : index
    %c0_44 = arith.constant 0 : index
    %90 = vector.load %arg9[%c0_43, %c0_44] : memref<12x256xf32, #tpu.memory_space<vmem>>, vector<3x256xf32>
    tpu.vector_store %arg9[%c0_43, %c0_44], %89 {strides = array<i32>} : memref<12x256xf32, #tpu.memory_space<vmem>>, vector<3x256xf32>,
    %cst_45 = arith.constant 0.000000e+00 : f32
    %cst_46 = arith.constant 1.000000e+00 : f32
    %91 = vector.broadcast %cst_45 : f32 to vector<3x256xf32>
    %92 = arith.maximumf %91, %77 : vector<3x256xf32>
    %93 = vector.broadcast %cst_46 : f32 to vector<3x256xf32>
    %94 = arith.minimumf %93, %92 : vector<3x256xf32>
    %95 = math.absf %94 : vector<3x256xf32>
    %cst_47 = arith.constant 9.99999997E-7 : f32
    %96 = vector.broadcast %cst_47 : f32 to vector<3x256xf32>
    %97 = arith.cmpf ole, %95, %96 : vector<3x256xf32>
    %cst_48 = arith.constant 9.99999997E-7 : f32
    %98 = vector.broadcast %cst_48 : f32 to vector<3x256xf32>
    %99 = arith.select %97, %98, %94 : vector<3x256xi1>, vector<3x256xf32>
    %cst_49 = arith.constant 0.000000e+00 : f32
    %100 = vector.broadcast %cst_49 : f32 to vector<3x256xf32>
    %101 = arith.maximumf %99, %100 : vector<3x256xf32>
    %cst_50 = arith.constant 0.416666657 : f32
    %102 = vector.broadcast %cst_50 : f32 to vector<3x256xf32>
    %103 = math.powf %101, %102 : vector<3x256xf32>
    %c3 = arith.constant 3 : index
    %c0_51 = arith.constant 0 : index
    %104 = vector.load %arg9[%c3, %c0_51] : memref<12x256xf32, #tpu.memory_space<vmem>>, vector<3x256xf32>
    tpu.vector_store %arg9[%c3, %c0_51], %103 {strides = array<i32>} : memref<12x256xf32, #tpu.memory_space<vmem>>, vector<3x256xf32>,
    %cst_52 = arith.constant 0.000000e+00 : f32
    %cst_53 = arith.constant 1.000000e+00 : f32
    %105 = vector.broadcast %cst_52 : f32 to vector<3x256xf32>
    %106 = arith.maximumf %105, %75 : vector<3x256xf32>
    %107 = vector.broadcast %cst_53 : f32 to vector<3x256xf32>
    %108 = arith.minimumf %107, %106 : vector<3x256xf32>
    %109 = math.absf %108 : vector<3x256xf32>
    %cst_54 = arith.constant 9.99999997E-7 : f32
    %110 = vector.broadcast %cst_54 : f32 to vector<3x256xf32>
    %111 = arith.cmpf ole, %109, %110 : vector<3x256xf32>
    %cst_55 = arith.constant 9.99999997E-7 : f32
    %112 = vector.broadcast %cst_55 : f32 to vector<3x256xf32>
    %113 = arith.select %111, %112, %108 : vector<3x256xi1>, vector<3x256xf32>
    %cst_56 = arith.constant 0.000000e+00 : f32
    %114 = vector.broadcast %cst_56 : f32 to vector<3x256xf32>
    %115 = arith.maximumf %113, %114 : vector<3x256xf32>
    %cst_57 = arith.constant 0.416666657 : f32
    %116 = vector.broadcast %cst_57 : f32 to vector<3x256xf32>
    %117 = math.powf %115, %116 : vector<3x256xf32>
    %c6 = arith.constant 6 : index
    %c0_58 = arith.constant 0 : index
    %118 = vector.load %arg9[%c6, %c0_58] : memref<12x256xf32, #tpu.memory_space<vmem>>, vector<3x256xf32>
    tpu.vector_store %arg9[%c6, %c0_58], %117 {strides = array<i32>} : memref<12x256xf32, #tpu.memory_space<vmem>>, vector<3x256xf32>,
    %c9 = arith.constant 9 : index
    %c0_59 = arith.constant 0 : index
    %119 = vector.load %arg9[%c9, %c0_59] : memref<12x256xf32, #tpu.memory_space<vmem>>, vector<3x256xf32>
    tpu.vector_store %arg9[%c9, %c0_59], %17 {strides = array<i32>} : memref<12x256xf32, #tpu.memory_space<vmem>>, vector<3x256xf32>,
    return
  }
  func.func @transform_0(%arg0: i32) -> (i32, i32) {
    %c0_i32 = arith.constant 0 : i32
    %c0_i32_0 = arith.constant 0 : i32
    return %arg0, %c0_i32 : i32, i32
  }
  func.func @transform_1(%arg0: i32) -> (i32, i32) {
    %c0_i32 = arith.constant 0 : i32
    %c0_i32_0 = arith.constant 0 : i32
    return %arg0, %c0_i32 : i32, i32
  }
  func.func @transform_2(%arg0: i32) -> (i32, i32) {
    %c0_i32 = arith.constant 0 : i32
    %c0_i32_0 = arith.constant 0 : i32
    return %arg0, %c0_i32 : i32, i32
  }
  func.func @transform_3(%arg0: i32) -> (i32, i32) {
    %c0_i32 = arith.constant 0 : i32
    %c0_i32_0 = arith.constant 0 : i32
    %c0_i32_1 = arith.constant 0 : i32
    return %c0_i32, %c0_i32_0 : i32, i32
  }
  func.func @transform_4(%arg0: i32) -> (i32, i32) {
    %c0_i32 = arith.constant 0 : i32
    %c0_i32_0 = arith.constant 0 : i32
    %c0_i32_1 = arith.constant 0 : i32
    return %c0_i32, %c0_i32_0 : i32, i32
  }
  func.func @transform_5(%arg0: i32) -> (i32, i32) {
    %c0_i32 = arith.constant 0 : i32
    %c0_i32_0 = arith.constant 0 : i32
    %c0_i32_1 = arith.constant 0 : i32
    return %c0_i32, %c0_i32_0 : i32, i32
  }
  func.func @transform_6(%arg0: i32) -> (i32, i32) {
    %c0_i32 = arith.constant 0 : i32
    %c0_i32_0 = arith.constant 0 : i32
    %c0_i32_1 = arith.constant 0 : i32
    return %c0_i32, %c0_i32_0 : i32, i32
  }
  func.func @transform_7(%arg0: i32) -> (i32, i32) {
    %c0_i32 = arith.constant 0 : i32
    %c0_i32_0 = arith.constant 0 : i32
    %c0_i32_1 = arith.constant 0 : i32
    return %c0_i32, %c0_i32_0 : i32, i32
  }
  func.func @transform_8(%arg0: i32) -> (i32, i32) {
    %c0_i32 = arith.constant 0 : i32
    %c0_i32_0 = arith.constant 0 : i32
    return %c0_i32, %arg0 : i32, i32
  }
}

</mosaic_0001>

<bundles_post_ra>
// kernel: tpu_custom_call.1
= control target key start
LH: loop header
LB: loop body
LE: loop exit
PB: predicated region body
PF: predicated region fallthrough
CT: control target
= control target key end

     0   :  { %vm70_vm0 = vcmask 261120   ;;  %s4036_s0 = inlined_call_operand.vmem [shape: f32[256,32], index: 0, kind: input, shape index: {}]   ;;  %s4037_s1 = inlined_call_operand.vmem [shape: f32[256,3], index: 1, kind: input, shape index: {}]   ;;  %s4038_s2 = inlined_call_operand.vmem [shape: f32[256,3], index: 2, kind: input, shape index: {}]   ;;  %s4039_s3 = inlined_call_operand.vmem [shape: f32[64,3], index: 3, kind: input, shape index: {}]   ;;  %s4040_s4 = inlined_call_operand.vmem [shape: f32[3,64], index: 4, kind: input, shape index: {}]   ;;  %s4041_s5 = inlined_call_operand.vmem [shape: f32[64,32], index: 5, kind: input, shape index: {}]   ;;  %s4042_s6 = inlined_call_operand.vmem [shape: f32[64,64], index: 6, kind: input, shape index: {}]   ;;  %s4043_s7 = inlined_call_operand.vmem [shape: f32[5,64], index: 7, kind: input, shape index: {}]   ;;  %s4044_s8 = inlined_call_operand.hbm [shape: f32[12,256], index: 8, kind: output, shape index: {}]  }
   0x1   :  { %v61_v0 = vld [vmem:[%s4036_s0 + $0xf8] sm:$0xff]  ;;  %v60_v2 = vld [vmem:[%s4036_s0 + $0xf0] sm:$0xff]  ;;  %v59_v4 = vld [vmem:[%s4036_s0 + $0xe8] sm:$0xff] }
   0x2   :  { %v45_v1 = vld [vmem:[%s4036_s0 + $0x78] sm:$0xff]  ;;  %2278 = vmatprep.subr.msk.mxu0 %vm70_vm0, %v61_v0  ;;  %v44_v3 = vld [vmem:[%s4036_s0 + $0x70] sm:$0xff]  ;;  %v43_v5 = vld [vmem:[%s4036_s0 + $0x68] sm:$0xff] }
   0x3   :  { %2279 = vmatpush3.xpose.msk.msra.mxu0 %vm70_vm0, %v45_v1  ;;  %v58_v6 = vld [vmem:[%s4036_s0 + $0xe0] sm:$0xff]  ;;  %v57_v9 = vld [vmem:[%s4036_s0 + $0xd8] sm:$0xff] }
   0x4   :  { %2280 = vmatprep.subr.msk.mxu0 %vm70_vm0, %v60_v2  ;;  %v62_v7 = vld [vmem:[%s4041_s5] sm:$0xff] }
   0x5   :  { %v42_v8 = vld [vmem:[%s4036_s0 + $0x60] sm:$0xff]  ;;  %2310 = vmatprep.mubr.msk.f32.mxu0 %vm70_vm0, %v62_v7 }
   0x7   :  { %2281 = vmatpush3.xpose.msk.msra.mxu0 %vm70_vm0, %v44_v3 }
   0x8   :  { %2282 = vmatprep.subr.msk.mxu0 %vm70_vm0, %v59_v4 }
   0xb   :  { %2283 = vmatpush3.xpose.msk.msra.mxu0 %vm70_vm0, %v43_v5 }
   0xc   :  { %2284 = vmatprep.subr.msk.mxu0 %vm70_vm0, %v58_v6 }
   0xd   :  { %13 = vsyncpa [#allocation3], 0  ;;  %v41_v10 = vld [vmem:[%s4036_s0 + $0x58] sm:$0xff]  ;;  %v56_v11 = vld [vmem:[%s4036_s0 + $0xd0] sm:$0xff]  ;;  %v4045_v40 = vmov 0.0   ;;  %vm712_vm1 = vcmask 23552  }
   0xe   :  { %v40_v12 = vld [vmem:[%s4036_s0 + $0x50] sm:$0xff]  ;;  %v55_v13 = vld [vmem:[%s4036_s0 + $0xc8] sm:$0xff]  ;;  %v54_v15 = vld [vmem:[%s4036_s0 + $0xc0] sm:$0xff]  ;;  %417 = vmatprep.mubr.f32.mxu1 %v4045_v40  ;;  %vm328_vm2 = vcmask 523264  }
   0xf   :  { %2285 = vmatpush3.xpose.msk.msra.mxu0 %vm70_vm0, %v42_v8  ;;  %v39_v14 = vld [vmem:[%s4036_s0 + $0x48] sm:$0xff]  ;;  %v38_v16 = vld [vmem:[%s4036_s0 + $0x40] sm:$0xff]  ;;  %v53_v17 = vld [vmem:[%s4036_s0 + $0xb8] sm:$0xff] }
  0x10   :  { %2286 = vmatprep.subr.msk.mxu0 %vm70_vm0, %v57_v9  ;;  %v37_v18 = vld [vmem:[%s4036_s0 + $0x38] sm:$0xff]  ;;  %v52_v19 = vld [vmem:[%s4036_s0 + $0xb0] sm:$0xff]  ;;  %v51_v21 = vld [vmem:[%s4036_s0 + $0xa8] sm:$0xff] }
  0x11   :  { %v36_v20 = vld [vmem:[%s4036_s0 + $0x30] sm:$0xff]  ;;  %v35_v22 = vld [vmem:[%s4036_s0 + $0x28] sm:$0xff]  ;;  %v50_v23 = vld [vmem:[%s4036_s0 + $0xa0] sm:$0xff] }
  0x12   :  { %v34_v24 = vld [vmem:[%s4036_s0 + $0x20] sm:$0xff]  ;;  %v49_v25 = vld [vmem:[%s4036_s0 + $0x98] sm:$0xff]  ;;  %v48_v27 = vld [vmem:[%s4036_s0 + $0x90] sm:$0xff] }
  0x13   :  { %2287 = vmatpush3.xpose.msk.msra.mxu0 %vm70_vm0, %v41_v10  ;;  %v33_v26 = vld [vmem:[%s4036_s0 + $0x18] sm:$0xff]  ;;  %v32_v28 = vld [vmem:[%s4036_s0 + $0x10] sm:$0xff]  ;;  %v47_v29 = vld [vmem:[%s4036_s0 + $0x88] sm:$0xff] }
  0x14   :  { %2288 = vmatprep.subr.msk.mxu0 %vm70_vm0, %v56_v11  ;;  %v31_v30 = vld [vmem:[%s4036_s0 + $0x8] sm:$0xff]  ;;  %v46_v31 = vld [vmem:[%s4036_s0 + $0x80] sm:$0xff]  ;;  %v64_v34 = vld [vmem:[%s4041_s5 + $0x10] sm:$0xff] }
  0x15   :  { %v30_v32 = vld [vmem:[%s4036_s0] sm:$0xff]  ;;  %v63_v33 = vld [vmem:[%s4041_s5 + $0x8] sm:$0xff]  ;;  %v65_v35 = vld [vmem:[%s4041_s5 + $0x18] sm:$0xff] }
  0x16   :  { %v66_v36 = vld [vmem:[%s4041_s5 + $0x20] sm:$0xff]  ;;  %v67_v37 = vld [vmem:[%s4041_s5 + $0x28] sm:$0xff]  ;;  %v68_v38 = vld [vmem:[%s4041_s5 + $0x30] sm:$0xff] }
  0x17   :  { %2289 = vmatpush3.xpose.msk.msra.mxu0 %vm70_vm0, %v40_v12  ;;  %v69_v39 = vld [vmem:[%s4041_s5 + $0x38] sm:$0xff]  ;;  %v669_v43 = vld [vmem:[%s4038_s2 + $0xf0] sm:$0xff]  ;;  %v668_v48 = vld [vmem:[%s4038_s2 + $0xe8] sm:$0xff] }
  0x18   :  { %2290 = vmatprep.subr.msk.mxu0 %vm70_vm0, %v55_v13  ;;  %v670_v41 = vld [vmem:[%s4038_s2 + $0xf8] sm:$0xff]  ;;  %v3041_v46 = vsub.f32 0.0, %v669_v43  ;;  %v653_v47 = vld [vmem:[%s4038_s2 + $0x70] sm:$0xff]  ;;  %v3057_v50 = vsub.f32 0.0, %v668_v48  ;;  %v652_v51 = vld [vmem:[%s4038_s2 + $0x68] sm:$0xff] }
  0x19   :  { %v654_v42 = vld [vmem:[%s4038_s2 + $0x78] sm:$0xff]  ;;  %v3037_v44 = vsub.f32 0.0, %v670_v41  ;;  %v3053_v49 = vsub.f32 0.0, %v653_v47  ;;  %v667_v52 = vld [vmem:[%s4038_s2 + $0xe0] sm:$0xff]  ;;  %v3067_v53 = vsub.f32 0.0, %v652_v51  ;;  %v648_v47 = vld [vmem:[%s4038_s2 + $0x48] sm:$0xff] }
  0x1a   :  { %v3039_v45 = vsub.f32 0.0, %v654_v42  ;;  %v3071_v54 = vsub.f32 0.0, %v667_v52  ;;  %v651_v55 = vld [vmem:[%s4038_s2 + $0x60] sm:$0xff]  ;;  %v664_v42 = vld [vmem:[%s4038_s2 + $0xc8] sm:$0xff]  ;;  %v3160_v48 = vsub.f32 0.0, %v648_v47 }
  0x1b   :  { %2291 = vmatpush3.xpose.msk.msra.mxu0 %vm70_vm0, %v39_v14  ;;  %v3078_v56 = vsub.f32 0.0, %v651_v55  ;;  %v3155_v43 = vsub.f32 0.0, %v664_v42  ;;  %v663_v51 = vld [vmem:[%s4038_s2 + $0xc0] sm:$0xff] }
  0x1c   :  { %2292 = vmatprep.subr.msk.mxu0 %vm70_vm0, %v54_v15  ;;  %v3169_v52 = vsub.f32 0.0, %v663_v51  ;;  %v647_v55 = vld [vmem:[%s4038_s2 + $0x40] sm:$0xff] }
  0x1d   :  { %v1382_v51 = vmul.f32 %v3155_v43, %v3155_v43 }
  0x1f   :  { %2293 = vmatpush3.xpose.msk.msra.mxu0 %vm70_vm0, %v38_v16 }
  0x20   :  { %2294 = vmatprep.subr.msk.mxu0 %vm70_vm0, %v53_v17 }
  0x23   :  { %2295 = vmatpush3.xpose.msk.msra.mxu0 %vm70_vm0, %v37_v18 }
  0x24   :  { %2296 = vmatprep.subr.msk.mxu0 %vm70_vm0, %v52_v19 }
  0x27   :  { %2297 = vmatpush3.xpose.msk.msra.mxu0 %vm70_vm0, %v36_v20 }
  0x28   :  { %2298 = vmatprep.subr.msk.mxu0 %vm70_vm0, %v51_v21 }
  0x2b   :  { %2299 = vmatpush3.xpose.msk.msra.mxu0 %vm70_vm0, %v35_v22 }
  0x2c   :  { %2300 = vmatprep.subr.msk.mxu0 %vm70_vm0, %v50_v23 }
  0x2f   :  { %2301 = vmatpush3.xpose.msk.msra.mxu0 %vm70_vm0, %v34_v24 }
  0x30   :  { %2302 = vmatprep.subr.msk.mxu0 %vm70_vm0, %v49_v25  ;;  %v320_v25 = vld [vmem:[%s4042_s6] sm:$0xff] }
  0x33   :  { %2303 = vmatpush3.xpose.msk.msra.mxu0 %vm70_vm0, %v33_v26  ;;  %v321_v26 = vld [vmem:[%s4042_s6 + $0x8] sm:$0xff] }
  0x34   :  { %2304 = vmatprep.subr.msk.mxu0 %vm70_vm0, %v48_v27  ;;  %v322_v27 = vld [vmem:[%s4042_s6 + $0x10] sm:$0xff] }
  0x37   :  { %2305 = vmatpush3.xpose.msk.msra.mxu0 %vm70_vm0, %v32_v28  ;;  %v323_v28 = vld [vmem:[%s4042_s6 + $0x18] sm:$0xff] }
  0x38   :  { %2306 = vmatprep.subr.msk.mxu0 %vm70_vm0, %v47_v29  ;;  %v324_v29 = vld [vmem:[%s4042_s6 + $0x20] sm:$0xff] }
  0x3b   :  { %2307 = vmatpush3.xpose.msk.msra.mxu0 %vm70_vm0, %v31_v30  ;;  %v325_v30 = vld [vmem:[%s4042_s6 + $0x28] sm:$0xff] }
  0x3c   :  { %2308 = vmatprep.subr.msk.mxu0 %vm70_vm0, %v46_v31  ;;  %v326_v31 = vld [vmem:[%s4042_s6 + $0x30] sm:$0xff] }
  0x3f   :  { %2309 = vmatpush3.xpose.msk.msra.mxu0 %vm70_vm0, %v30_v32  ;;  %v327_v32 = vld [vmem:[%s4042_s6 + $0x38] sm:$0xff] }
  0x40   :  { %2374 = vmatprep.subr.msk.mxu0 %vm712_vm1, %v3037_v44 }
  0x42   :  { %2311 = vmatmul.mubr.msk.f32.vlgmr.msra.gmra.mxu0 %vm70_vm0, %v62_v7 }
  0x43   :  { %2312 = vmatprep.mubr.msk.f32.mxu0 %vm70_vm0, %v63_v33  ;;  %2375 = vmatpush3.xpose.msk.msra.mxu0 %vm712_vm1, %v3039_v45 }
  0x44   :  { %2376 = vmatprep.subr.msk.mxu0 %vm712_vm1, %v3041_v46 }
  0x46   :  { %2313 = vmatmul.mubr.msk.f32.gmra.mxu0 %vm70_vm0, %v63_v33  ;;  %v666_v33 = vld [vmem:[%s4038_s2 + $0xd8] sm:$0xff] }
  0x47   :  { %2314 = vmatprep.mubr.msk.f32.mxu0 %vm70_vm0, %v64_v34  ;;  %2377 = vmatpush3.xpose.msk.msra.mxu0 %vm712_vm1, %v3053_v49 }
  0x48   :  { %2378 = vmatprep.subr.msk.mxu0 %vm712_vm1, %v3057_v50 }
  0x4a   :  { %2315 = vmatmul.mubr.msk.f32.gmra.mxu0 %vm70_vm0, %v64_v34  ;;  %v3127_v34 = vsub.f32 0.0, %v666_v33  ;;  %v1385_v33 = vmul.f32 %v3071_v54, %v3071_v54 }
  0x4b   :  { %2316 = vmatprep.mubr.msk.f32.mxu0 %vm70_vm0, %v65_v35  ;;  %2379 = vmatpush3.xpose.msk.msra.mxu0 %vm712_vm1, %v3067_v53 }
  0x4c   :  { %2380 = vmatprep.subr.msk.mxu0 %vm712_vm1, %v3071_v54 }
  0x4e   :  { %2317 = vmatmul.mubr.msk.f32.gmra.mxu0 %vm70_vm0, %v65_v35  ;;  %v650_v35 = vld [vmem:[%s4038_s2 + $0x58] sm:$0xff] }
  0x4f   :  { %2318 = vmatprep.mubr.msk.f32.mxu0 %vm70_vm0, %v66_v36  ;;  %2381 = vmatpush3.xpose.msk.msra.mxu0 %vm712_vm1, %v3078_v56 }
  0x50   :  { %2382 = vmatprep.subr.msk.mxu0 %vm712_vm1, %v3127_v34 }
  0x52   :  { %2319 = vmatmul.mubr.msk.f32.gmra.mxu0 %vm70_vm0, %v66_v36  ;;  %v3132_v36 = vsub.f32 0.0, %v650_v35  ;;  %v1369_v35 = vmul.f32 %v3078_v56, %v3078_v56 }
  0x53   :  { %2320 = vmatprep.mubr.msk.f32.mxu0 %vm70_vm0, %v67_v37 }
  0x54   :  { %2383 = vmatpush3.xpose.msk.msra.mxu0 %vm712_vm1, %v3132_v36 }
  0x56   :  { %2321 = vmatmul.mubr.msk.f32.gmra.mxu0 %vm70_vm0, %v67_v37  ;;  %v665_v37 = vld [vmem:[%s4038_s2 + $0xd0] sm:$0xff] }
  0x57   :  { %2322 = vmatprep.mubr.msk.f32.mxu0 %vm70_vm0, %v68_v38 }
  0x5a   :  { %2323 = vmatmul.mubr.msk.f32.gmra.mxu0 %vm70_vm0, %v68_v38  ;;  %v3141_v38 = vsub.f32 0.0, %v665_v37  ;;  %v1384_v37 = vmul.f32 %v3127_v34, %v3127_v34 }
  0x5b   :  { %2324 = vmatprep.mubr.msk.f32.mxu0 %vm70_vm0, %v69_v39 }
  0x5c   :  { %2384 = vmatprep.subr.msk.mxu0 %vm712_vm1, %v3141_v38  ;;  %v1383_v42 = vmul.f32 %v3141_v38, %v3141_v38 }
  0x5e   :  { %2325 = vmatmul.mubr.msk.f32.gmra.mxu0 %vm70_vm0, %v69_v39  ;;  %v649_v39 = vld [vmem:[%s4038_s2 + $0x50] sm:$0xff] }
  0x5f   :  { %v3146_v41 = vsub.f32 0.0, %v649_v39  ;;  %v1368_v39 = vmul.f32 %v3132_v36, %v3132_v36 }
  0x61   :  { %2385 = vmatpush3.xpose.msk.msra.mxu0 %vm712_vm1, %v3146_v41  ;;  %v1367_v47 = vmul.f32 %v3146_v41, %v3146_v41 }
  0x62   :  { %2386 = vmatprep.subr.msk.mxu0 %vm712_vm1, %v3155_v43 }
  0x65   :  { %2387 = vmatpush3.xpose.msk.msra.mxu0 %vm712_vm1, %v3160_v48 }
  0x66   :  { %2388 = vmatprep.subr.msk.mxu0 %vm712_vm1, %v3169_v52 }
 0x102   :  { %v257_v57 = vpop.f32.mrf.mxu0 }
 0x103   :  { %v304_v24 = vmax.f32 %v257_v57, 0.0  ;;  %v3174_v57 = vsub.f32 0.0, %v647_v55  ;;  %v1366_v55 = vmul.f32 %v3160_v48, %v3160_v48 }
 0x104   :  { %v259_v58 = vpop.f32.mrf.mxu0 }
 0x105   :  { %v305_v23 = vmax.f32 %v259_v58, 0.0  ;;  %2389 = vmatpush3.xpose.msk.msra.mxu0 %vm712_vm1, %v3174_v57  ;;  %v662_v58 = vld [vmem:[%s4038_s2 + $0xb8] sm:$0xff] }
 0x106   :  { %v263_v59 = vpop.f32.mrf.mxu0 }
 0x107   :  { %v306_v22 = vmax.f32 %v263_v59, 0.0  ;;  %v3183_v59 = vsub.f32 0.0, %v662_v58  ;;  %v1381_v58 = vmul.f32 %v3169_v52, %v3169_v52 }
 0x108   :  { %v265_v60 = vpop.f32.mrf.mxu0 }
 0x109   :  { %v307_v21 = vmax.f32 %v265_v60, 0.0  ;;  %v646_v60 = vld [vmem:[%s4038_s2 + $0x38] sm:$0xff]  ;;  %2390 = vmatprep.subr.msk.mxu0 %vm712_vm1, %v3183_v59 }
 0x10a   :  { %v269_v61 = vpop.f32.mrf.mxu0 }
 0x10b   :  { %v308_v20 = vmax.f32 %v269_v61, 0.0  ;;  %v3188_v61 = vsub.f32 0.0, %v646_v60  ;;  %v1365_v60 = vmul.f32 %v3174_v57, %v3174_v57 }
 0x10c   :  { %v271_v62 = vpop.f32.mrf.mxu0 }
 0x10d   :  { %v309_v19 = vmax.f32 %v271_v62, 0.0  ;;  %2391 = vmatpush3.xpose.msk.msra.mxu0 %vm712_vm1, %v3188_v61  ;;  %v661_v62 = vld [vmem:[%s4038_s2 + $0xb0] sm:$0xff] }
 0x10e   :  { %v275_v63 = vpop.f32.mrf.mxu0 }
 0x10f   :  { %v310_v18 = vmax.f32 %v275_v63, 0.0  ;;  %v3197_v63 = vsub.f32 0.0, %v661_v62  ;;  %v1380_v62 = vmul.f32 %v3183_v59, %v3183_v59 }
 0x110   :  { %v277_v0 = vpop.f32.mrf.mxu0 }
 0x111   :  { %v311_v17 = vmax.f32 %v277_v0, 0.0  ;;  %v645_v0 = vld [vmem:[%s4038_s2 + $0x30] sm:$0xff]  ;;  %2392 = vmatprep.subr.msk.mxu0 %vm712_vm1, %v3197_v63 }
 0x112   :  { %v281_v1 = vpop.f32.mrf.mxu0 }
 0x113   :  { %v312_v16 = vmax.f32 %v281_v1, 0.0  ;;  %v3202_v1 = vsub.f32 0.0, %v645_v0  ;;  %v1364_v0 = vmul.f32 %v3188_v61, %v3188_v61 }
 0x114   :  { %v283_v2 = vpop.f32.mrf.mxu0 }
 0x115   :  { %v313_v15 = vmax.f32 %v283_v2, 0.0  ;;  %2393 = vmatpush3.xpose.msk.msra.mxu0 %vm712_vm1, %v3202_v1  ;;  %v660_v2 = vld [vmem:[%s4038_s2 + $0xa8] sm:$0xff] }
 0x116   :  { %v287_v3 = vpop.f32.mrf.mxu0 }
 0x117   :  { %v314_v14 = vmax.f32 %v287_v3, 0.0  ;;  %v3211_v3 = vsub.f32 0.0, %v660_v2  ;;  %v3358_v2 = vld [vmem:[%s4039_s3 + $0x8] sm:$0xff] }
 0x118   :  { %v289_v4 = vpop.f32.mrf.mxu0 }
 0x119   :  { %v315_v13 = vmax.f32 %v289_v4, 0.0  ;;  %v644_v4 = vld [vmem:[%s4038_s2 + $0x28] sm:$0xff]  ;;  %2394 = vmatprep.subr.msk.mxu0 %vm712_vm1, %v3211_v3 }
 0x11a   :  { %v293_v5 = vpop.f32.mrf.mxu0 }
 0x11b   :  { %v316_v12 = vmax.f32 %v293_v5, 0.0  ;;  %v3216_v5 = vsub.f32 0.0, %v644_v4  ;;  %v1379_v4 = vmul.f32 %v3197_v63, %v3197_v63 }
 0x11c   :  { %v295_v6 = vpop.f32.mrf.mxu0 }
 0x11d   :  { %v317_v11 = vmax.f32 %v295_v6, 0.0  ;;  %2395 = vmatpush3.xpose.msk.msra.mxu0 %vm712_vm1, %v3216_v5  ;;  %v659_v6 = vld [vmem:[%s4038_s2 + $0xa0] sm:$0xff] }
 0x11e   :  { %v299_v7 = vpop.f32.mrf.mxu0 }
 0x11f   :  { %v318_v10 = vmax.f32 %v299_v7, 0.0  ;;  %v3225_v7 = vsub.f32 0.0, %v659_v6  ;;  %v1363_v6 = vmul.f32 %v3202_v1, %v3202_v1 }
 0x120   :  { %v301_v8 = vpop.f32.mrf.mxu0 }
 0x121   :  { %v319_v9 = vmax.f32 %v301_v8, 0.0  ;;  %v643_v8 = vld [vmem:[%s4038_s2 + $0x20] sm:$0xff]  ;;  %2396 = vmatprep.subr.msk.mxu0 %vm712_vm1, %v3225_v7 }
 0x123   :  { %369 = vmatprep.subr.mxu1 %v319_v9  ;;  %v3230_v9 = vsub.f32 0.0, %v643_v8  ;;  %v3373_v8 = vld [vmem:[%s4039_s3 + $0x10] sm:$0xff] }
 0x124   :  { %370 = vmatpush1.msra.mxu1 %v318_v10  ;;  %v658_v10 = vld [vmem:[%s4038_s2 + $0x98] sm:$0xff] }
 0x125   :  { %371 = vmatprep.subr.mxu1 %v317_v11  ;;  %2397 = vmatpush3.xpose.msk.msra.mxu0 %vm712_vm1, %v3230_v9  ;;  %v3239_v11 = vsub.f32 0.0, %v658_v10  ;;  %v1378_v10 = vmul.f32 %v3211_v3, %v3211_v3 }
 0x126   :  { %372 = vmatpush1.msra.mxu1 %v316_v12  ;;  %v642_v12 = vld [vmem:[%s4038_s2 + $0x18] sm:$0xff] }
 0x127   :  { %373 = vmatprep.subr.mxu1 %v315_v13  ;;  %v3244_v13 = vsub.f32 0.0, %v642_v12  ;;  %2398 = vmatprep.subr.msk.mxu0 %vm712_vm1, %v3239_v11  ;;  %v1362_v12 = vmul.f32 %v3216_v5, %v3216_v5 }
 0x128   :  { %374 = vmatpush1.msra.mxu1 %v314_v14  ;;  %v657_v14 = vld [vmem:[%s4038_s2 + $0x90] sm:$0xff] }
 0x129   :  { %375 = vmatprep.subr.mxu1 %v313_v15  ;;  %4059 = vst [vmem:[#allocation5_spill] sm:$0xff] %v3244_v13  ;;  %2399 = vmatpush3.xpose.msk.msra.mxu0 %vm712_vm1, %v3244_v13  ;;  %v3253_v15 = vsub.f32 0.0, %v657_v14  ;;  %v3388_v14 = vld [vmem:[%s4039_s3 + $0x18] sm:$0xff] }
 0x12a   :  { %376 = vmatpush1.msra.mxu1 %v312_v16  ;;  %v641_v16 = vld [vmem:[%s4038_s2 + $0x10] sm:$0xff] }
 0x12b   :  { %377 = vmatprep.subr.mxu1 %v311_v17  ;;  %4060 = vst [vmem:[#allocation6_spill] sm:$0xff] %v3253_v15  ;;  %v3258_v17 = vsub.f32 0.0, %v641_v16  ;;  %2400 = vmatprep.subr.msk.mxu0 %vm712_vm1, %v3253_v15  ;;  %v1377_v16 = vmul.f32 %v3225_v7, %v3225_v7 }
 0x12c   :  { %378 = vmatpush1.msra.mxu1 %v310_v18  ;;  %v656_v18 = vld [vmem:[%s4038_s2 + $0x88] sm:$0xff] }
 0x12d   :  { %379 = vmatprep.subr.mxu1 %v309_v19  ;;  %4061 = vst [vmem:[#allocation7_spill] sm:$0xff] %v3258_v17  ;;  %2401 = vmatpush3.xpose.msk.msra.mxu0 %vm712_vm1, %v3258_v17  ;;  %v3267_v19 = vsub.f32 0.0, %v656_v18  ;;  %v1361_v18 = vmul.f32 %v3230_v9, %v3230_v9 }
 0x12e   :  { %380 = vmatpush1.msra.mxu1 %v308_v20  ;;  %v640_v20 = vld [vmem:[%s4038_s2 + $0x8] sm:$0xff] }
 0x12f   :  { %381 = vmatprep.subr.mxu1 %v307_v21  ;;  %4062 = vst [vmem:[#allocation8_spill] sm:$0xff] %v3267_v19  ;;  %v3272_v21 = vsub.f32 0.0, %v640_v20  ;;  %2402 = vmatprep.subr.msk.mxu0 %vm712_vm1, %v3267_v19  ;;  %v3403_v20 = vld [vmem:[%s4039_s3 + $0x20] sm:$0xff] }
 0x130   :  { %382 = vmatpush1.msra.mxu1 %v306_v22  ;;  %v655_v22 = vld [vmem:[%s4038_s2 + $0x80] sm:$0xff] }
 0x131   :  { %383 = vmatprep.subr.mxu1 %v305_v23  ;;  %4063 = vst [vmem:[#allocation9_spill] sm:$0xff] %v3272_v21  ;;  %2403 = vmatpush3.xpose.msk.msra.mxu0 %vm712_vm1, %v3272_v21  ;;  %v3281_v23 = vsub.f32 0.0, %v655_v22  ;;  %v1376_v22 = vmul.f32 %v3239_v11, %v3239_v11 }
 0x132   :  { %384 = vmatpush1.msra.mxu1 %v304_v24  ;;  %v639_v24 = vld [vmem:[%s4038_s2] sm:$0xff] }
 0x133   :  { %2119 = vmatmul.mubr.msk.f32.vlgmr.msra.gmra.mxu1 %vm328_vm2, %v320_v25  ;;  %4064 = vst [vmem:[#allocation10_spill] sm:$0xff] %v3281_v23  ;;  %v3286_v25 = vsub.f32 0.0, %v639_v24  ;;  %2404 = vmatprep.subr.msk.mxu0 %vm712_vm1, %v3281_v23  ;;  %v1360_v24 = vmul.f32 %v3244_v13, %v3244_v13 }
 0x134   :  { %423 = vmatprep.mubr.f32.mxu1 %v4045_v40 }
 0x135   :  { %4065 = vst [vmem:[#allocation11_spill] sm:$0xff] %v3286_v25  ;;  %2405 = vmatpush3.xpose.msk.msra.mxu0 %vm712_vm1, %v3286_v25 }
 0x137   :  { %2120 = vmatmul.mubr.msk.f32.gmra.mxu1 %vm328_vm2, %v321_v26  ;;  %v1388_v26 = vmul.f32 %v3037_v44, %v3037_v44 }
 0x138   :  { %429 = vmatprep.mubr.f32.mxu1 %v4045_v40 }
 0x139   :  { %2456 = vmatprep.subr.msk.mxu0 %vm712_vm1, %v1388_v26  ;;  %v3418_v26 = vld [vmem:[%s4039_s3 + $0x28] sm:$0xff] }
 0x13b   :  { %2121 = vmatmul.mubr.msk.f32.gmra.mxu1 %vm328_vm2, %v322_v27  ;;  %v3297_v27 = vld [vmem:[%s4039_s3] sm:$0xff] }
 0x13c   :  { %435 = vmatprep.mubr.f32.mxu1 %v4045_v40  ;;  %2406 = vmatprep.mubr.msk.f32.mxu0 %vm712_vm1, %v3297_v27 }
 0x13d   :  { %2407 = vmatmul.mubr.msk.f32.vlgmr.msra.gmra.mxu0 %vm712_vm1, %v3297_v27 }
 0x13e   :  { %2408 = vmatprep.mubr.msk.f32.mxu0 %vm712_vm1, %v3358_v2 }
 0x13f   :  { %2122 = vmatmul.mubr.msk.f32.gmra.mxu1 %vm328_vm2, %v323_v28  ;;  %v1372_v28 = vmul.f32 %v3039_v45, %v3039_v45 }
 0x140   :  { %441 = vmatprep.mubr.f32.mxu1 %v4045_v40 }
 0x141   :  { %2457 = vmatpush3.xpose.msk.msra.mxu0 %vm712_vm1, %v1372_v28  ;;  %v1375_v28 = vmul.f32 %v3253_v15, %v3253_v15  ;;  %v3677_v15 = vld [vmem:[%s4037_s1 + $0x8] sm:$0xff] }
 0x142   :  { %2409 = vmatmul.mubr.msk.f32.gmra.mxu0 %vm712_vm1, %v3358_v2  ;;  %4069 = vst [vmem:[#allocation15_spill] sm:$0xff] %v3677_v15 }
 0x143   :  { %2123 = vmatmul.mubr.msk.f32.gmra.mxu1 %vm328_vm2, %v324_v29  ;;  %v1387_v29 = vmul.f32 %v3041_v46, %v3041_v46  ;;  %2410 = vmatprep.mubr.msk.f32.mxu0 %vm712_vm1, %v3373_v8 }
 0x144   :  { %447 = vmatprep.mubr.f32.mxu1 %v4045_v40 }
 0x145   :  { %2458 = vmatprep.subr.msk.mxu0 %vm712_vm1, %v1387_v29  ;;  %v1359_v29 = vmul.f32 %v3258_v17, %v3258_v17  ;;  %v3668_v17 = vld [vmem:[%s4037_s1 + $0x88] sm:$0xff] }
 0x146   :  { %2411 = vmatmul.mubr.msk.f32.gmra.mxu0 %vm712_vm1, %v3373_v8  ;;  %4068 = vst [vmem:[#allocation14_spill] sm:$0xff] %v3668_v17 }
 0x147   :  { %2124 = vmatmul.mubr.msk.f32.gmra.mxu1 %vm328_vm2, %v325_v30  ;;  %v1371_v30 = vmul.f32 %v3053_v49, %v3053_v49  ;;  %2412 = vmatprep.mubr.msk.f32.mxu0 %vm712_vm1, %v3388_v14 }
 0x148   :  { %453 = vmatprep.mubr.f32.mxu1 %v4045_v40 }
 0x149   :  { %2459 = vmatpush3.xpose.msk.msra.mxu0 %vm712_vm1, %v1371_v30  ;;  %v3433_v30 = vld [vmem:[%s4039_s3 + $0x30] sm:$0xff] }
 0x14a   :  { %2413 = vmatmul.mubr.msk.f32.gmra.mxu0 %vm712_vm1, %v3388_v14 }
 0x14b   :  { %2125 = vmatmul.mubr.msk.f32.gmra.mxu1 %vm328_vm2, %v326_v31  ;;  %v1386_v31 = vmul.f32 %v3057_v50, %v3057_v50  ;;  %2414 = vmatprep.mubr.msk.f32.mxu0 %vm712_vm1, %v3403_v20 }
 0x14c   :  { %459 = vmatprep.mubr.f32.mxu1 %v4045_v40 }
 0x14d   :  { %2460 = vmatprep.subr.msk.mxu0 %vm712_vm1, %v1386_v31  ;;  %v1374_v31 = vmul.f32 %v3267_v19, %v3267_v19  ;;  %v3663_v19 = vld [vmem:[%s4037_s1 + $0x10] sm:$0xff] }
 0x14e   :  { %2415 = vmatmul.mubr.msk.f32.gmra.mxu0 %vm712_vm1, %v3403_v20  ;;  %4067 = vst [vmem:[#allocation13_spill] sm:$0xff] %v3663_v19 }
 0x14f   :  { %2126 = vmatmul.mubr.msk.f32.gmra.mxu1 %vm328_vm2, %v327_v32  ;;  %v1370_v32 = vmul.f32 %v3067_v53, %v3067_v53  ;;  %2416 = vmatprep.mubr.msk.f32.mxu0 %vm712_vm1, %v3418_v26 }
 0x150   :  { %550 = vmatprep.mubr.f32.mxu1 %v4045_v40 }
 0x151   :  { %2461 = vmatpush3.xpose.msk.msra.mxu0 %vm712_vm1, %v1370_v32  ;;  %v1358_v32 = vmul.f32 %v3272_v21, %v3272_v21 }
 0x152   :  { %2462 = vmatprep.subr.msk.mxu0 %vm712_vm1, %v1385_v33  ;;  %2417 = vmatmul.mubr.msk.f32.gmra.mxu0 %vm712_vm1, %v3418_v26  ;;  %v3448_v33 = vld [vmem:[%s4039_s3 + $0x38] sm:$0xff] }
 0x153   :  { %2418 = vmatprep.mubr.msk.f32.mxu0 %vm712_vm1, %v3433_v30 }
 0x155   :  { %2463 = vmatpush3.xpose.msk.msra.mxu0 %vm712_vm1, %v1369_v35  ;;  %v1373_v35 = vmul.f32 %v3281_v23, %v3281_v23 }
 0x156   :  { %2464 = vmatprep.subr.msk.mxu0 %vm712_vm1, %v1384_v37  ;;  %2419 = vmatmul.mubr.msk.f32.gmra.mxu0 %vm712_vm1, %v3433_v30  ;;  %v1357_v37 = vmul.f32 %v3286_v25, %v3286_v25 }
 0x157   :  { %2420 = vmatprep.mubr.msk.f32.mxu0 %vm712_vm1, %v3448_v33 }
 0x159   :  { %2465 = vmatpush3.xpose.msk.msra.mxu0 %vm712_vm1, %v1368_v39  ;;  %v4046_v39 = vmov 1.0  }
 0x15a   :  { %2466 = vmatprep.subr.msk.mxu0 %vm712_vm1, %v1383_v42  ;;  %2421 = vmatmul.mubr.msk.f32.gmra.mxu0 %vm712_vm1, %v3448_v33 }
 0x15b   :  { %2488 = vmatprep.mubr.msk.f32.mxu0 %vm712_vm1, %v4046_v39 }
 0x15d   :  { %2467 = vmatpush3.xpose.msk.msra.mxu0 %vm712_vm1, %v1367_v47 }
 0x15e   :  { %2468 = vmatprep.subr.msk.mxu0 %vm712_vm1, %v1382_v51 }
 0x161   :  { %2469 = vmatpush3.xpose.msk.msra.mxu0 %vm712_vm1, %v1366_v55 }
 0x162   :  { %2470 = vmatprep.subr.msk.mxu0 %vm712_vm1, %v1381_v58 }
 0x165   :  { %2471 = vmatpush3.xpose.msk.msra.mxu0 %vm712_vm1, %v1365_v60 }
 0x166   :  { %2472 = vmatprep.subr.msk.mxu0 %vm712_vm1, %v1380_v62 }
 0x169   :  { %2473 = vmatpush3.xpose.msk.msra.mxu0 %vm712_vm1, %v1364_v0 }
 0x16a   :  { %2474 = vmatprep.subr.msk.mxu0 %vm712_vm1, %v1379_v4 }
 0x16d   :  { %2475 = vmatpush3.xpose.msk.msra.mxu0 %vm712_vm1, %v1363_v6 }
 0x16e   :  { %2476 = vmatprep.subr.msk.mxu0 %vm712_vm1, %v1378_v10 }
 0x171   :  { %2477 = vmatpush3.xpose.msk.msra.mxu0 %vm712_vm1, %v1362_v12 }
 0x172   :  { %2478 = vmatprep.subr.msk.mxu0 %vm712_vm1, %v1377_v16 }
 0x175   :  { %2479 = vmatpush3.xpose.msk.msra.mxu0 %vm712_vm1, %v1361_v18 }
 0x176   :  { %2480 = vmatprep.subr.msk.mxu0 %vm712_vm1, %v1376_v22 }
 0x179   :  { %2481 = vmatpush3.xpose.msk.msra.mxu0 %vm712_vm1, %v1360_v24 }
 0x17a   :  { %2482 = vmatprep.subr.msk.mxu0 %vm712_vm1, %v1375_v28 }
 0x17d   :  { %2483 = vmatpush3.xpose.msk.msra.mxu0 %vm712_vm1, %v1359_v29 }
 0x17e   :  { %2484 = vmatprep.subr.msk.mxu0 %vm712_vm1, %v1374_v31 }
 0x181   :  { %2485 = vmatpush3.xpose.msk.msra.mxu0 %vm712_vm1, %v1358_v32 }
 0x182   :  { %2486 = vmatprep.subr.msk.mxu0 %vm712_vm1, %v1373_v35 }
 0x185   :  { %2487 = vmatpush3.xpose.msk.msra.mxu0 %vm712_vm1, %v1357_v37 }
 0x188   :  { %2489 = vmatmul.mubr.msk.f32.vlgmr.msra.gmra.mxu0 %vm712_vm1, %v4046_v39 }
 0x189   :  { %1974 = vmatprep.mubr.f32.mxu0 %v4045_v40 }
 0x1f3   :  { %v419_v42 = vpop.f32.mrf.mxu1 }
 0x1f5   :  { %v421_v47 = vpop.f32.mrf.mxu1 }
 0x1f7   :  { %v425_v51 = vpop.f32.mrf.mxu1 }
 0x1f9   :  { %v427_v55 = vpop.f32.mrf.mxu1 }
 0x1fb   :  { %v431_v58 = vpop.f32.mrf.mxu1 }
 0x1fd   :  { %v433_v60 = vpop.f32.mrf.mxu1 }
 0x1fe   :  { %v471_v21 = vmax.f32 %v433_v60, 0.0  ;;  %v3542_v60 = vld [vmem:[%s4037_s1 + $0xd0] sm:$0xff] }
 0x1ff   :  { %v437_v62 = vpop.f32.mrf.mxu1 }
 0x200   :  { %v472_v23 = vmax.f32 %v437_v62, 0.0  ;;  %v3551_v62 = vld [vmem:[%s4037_s1 + $0x50] sm:$0xff] }
 0x201   :  { %v439_v0 = vpop.f32.mrf.mxu1 }
 0x202   :  { %v473_v25 = vmax.f32 %v439_v0, 0.0  ;;  %v3556_v0 = vld [vmem:[%s4037_s1 + $0xc8] sm:$0xff] }
 0x203   :  { %v443_v4 = vpop.f32.mrf.mxu1 }
 0x204   :  { %v474_v39 = vmax.f32 %v443_v4, 0.0  ;;  %v482_v4 = vld [vmem:[%s4043_s7] sm:$0x1f] }
 0x205   :  { %v445_v6 = vpop.f32.mrf.mxu1 }
 0x206   :  { %v475_v40 = vmax.f32 %v445_v6, 0.0  ;;  %v3565_v6 = vld [vmem:[%s4037_s1 + $0x48] sm:$0xff] }
 0x207   :  { %v449_v10 = vpop.f32.mrf.mxu1 }
 0x208   :  { %v476_v37 = vmax.f32 %v449_v10, 0.0  ;;  %v466_v10 = vmax.f32 %v419_v42, 0.0  ;;  %v3509_v42 = vld [vmem:[%s4037_s1 + $0x68] sm:$0xff] }
 0x209   :  { %v451_v12 = vpop.f32.mrf.mxu1 }
 0x20a   :  { %v477_v35 = vmax.f32 %v451_v12, 0.0  ;;  %v467_v12 = vmax.f32 %v421_v47, 0.0  ;;  %v3514_v47 = vld [vmem:[%s4037_s1 + $0xe0] sm:$0xff] }
 0x20b   :  { %v455_v16 = vpop.f32.mrf.mxu1 }
 0x20c   :  { %v478_v32 = vmax.f32 %v455_v16, 0.0  ;;  %v468_v16 = vmax.f32 %v425_v51, 0.0  ;;  %v3523_v51 = vld [vmem:[%s4037_s1 + $0x60] sm:$0xff] }
 0x20d   :  { %v457_v18 = vpop.f32.mrf.mxu1 }
 0x20e   :  { %v479_v31 = vmax.f32 %v457_v18, 0.0  ;;  %v469_v18 = vmax.f32 %v427_v55, 0.0  ;;  %v3528_v55 = vld [vmem:[%s4037_s1 + $0xd8] sm:$0xff] }
 0x20f   :  { %v461_v22 = vpop.f32.mrf.mxu1 }
 0x210   :  { %v480_v29 = vmax.f32 %v461_v22, 0.0  ;;  %v3570_v22 = vld [vmem:[%s4037_s1 + $0xc0] sm:$0xff] }
 0x211   :  { %v463_v24 = vpop.f32.mrf.mxu1 }
 0x212   :  { %v481_v28 = vmax.f32 %v463_v24, 0.0  ;;  %v470_v24 = vmax.f32 %v431_v58, 0.0  ;;  %v3537_v58 = vld [vmem:[%s4037_s1 + $0x58] sm:$0xff] }
 0x214   :  { %502 = vmatprep.subr.mxu1 %v481_v28  ;;  %v3579_v28 = vld [vmem:[%s4037_s1 + $0x40] sm:$0xff] }
 0x215   :  { %503 = vmatpush1.msra.mxu1 %v480_v29  ;;  %v3584_v29 = vld [vmem:[%s4037_s1 + $0xb8] sm:$0xff] }
 0x216   :  { %504 = vmatprep.subr.mxu1 %v479_v31  ;;  %v3593_v31 = vld [vmem:[%s4037_s1 + $0x38] sm:$0xff] }
 0x217   :  { %505 = vmatpush1.msra.mxu1 %v478_v32  ;;  %v3598_v32 = vld [vmem:[%s4037_s1 + $0xb0] sm:$0xff] }
 0x218   :  { %506 = vmatprep.subr.mxu1 %v477_v35  ;;  %v3607_v35 = vld [vmem:[%s4037_s1 + $0x30] sm:$0xff] }
 0x219   :  { %507 = vmatpush1.msra.mxu1 %v476_v37  ;;  %v3612_v37 = vld [vmem:[%s4037_s1 + $0xa8] sm:$0xff] }
 0x21a   :  { %508 = vmatprep.subr.mxu1 %v475_v40  ;;  %v3471_v40 = vld [vmem:[%s4037_s1 + $0xf8] sm:$0xff] }
 0x21b   :  { %509 = vmatpush1.msra.mxu1 %v474_v39  ;;  %v3500_v39 = vld [vmem:[%s4037_s1 + $0xe8] sm:$0xff]  ;;  %v1186_v13 = vmul.f32 %v3037_v44, %v3471_v40 }
 0x21c   :  { %510 = vmatprep.subr.mxu1 %v473_v25  ;;  %v3495_v25 = vld [vmem:[%s4037_s1 + $0x70] sm:$0xff] }
 0x21d   :  { %511 = vmatpush1.msra.mxu1 %v472_v23  ;;  %v3481_v23 = vld [vmem:[%s4037_s1 + $0xf0] sm:$0xff]  ;;  %v1169_v44 = vmul.f32 %v3053_v49, %v3495_v25  ;;  %v1183_v49 = vmul.f32 %v3071_v54, %v3514_v47  ;;  %v1166_v54 = vmul.f32 %v3132_v36, %v3537_v58  ;;  %v1180_v36 = vmul.f32 %v3155_v43, %v3556_v0 }
 0x21e   :  { %512 = vmatprep.subr.mxu1 %v471_v21  ;;  %v3476_v21 = vld [vmem:[%s4037_s1 + $0x78] sm:$0xff]  ;;  %v1163_v43 = vmul.f32 %v3174_v57, %v3579_v28  ;;  %v1177_v57 = vmul.f32 %v3197_v63, %v3598_v32 }
 0x21f   :  { %513 = vmatpush1.msra.mxu1 %v470_v24  ;;  %v3621_v24 = vld [vmem:[%s4037_s1 + $0x28] sm:$0xff] }
 0x220   :  { %514 = vmatprep.subr.mxu1 %v469_v18  ;;  %v3626_v18 = vld [vmem:[%s4037_s1 + $0xa0] sm:$0xff] }
 0x221   :  { %515 = vmatpush1.msra.mxu1 %v468_v16  ;;  %v3635_v16 = vld [vmem:[%s4037_s1 + $0x20] sm:$0xff]  ;;  %v1175_v63 = vmul.f32 %v3225_v7, %v3626_v18 }
 0x222   :  { %516 = vmatprep.subr.mxu1 %v467_v12  ;;  %v3640_v12 = vld [vmem:[%s4037_s1 + $0x98] sm:$0xff] }
 0x223   :  { %517 = vmatpush1.msra.mxu1 %v466_v10  ;;  %v3649_v10 = vld [vmem:[%s4037_s1 + $0x18] sm:$0xff] }
 0x224   :  { %2127 = vmatmul.mubr.msk.f32.vlgmr.msra.gmra.mxu1 %vm328_vm2, %v482_v4  ;;  %2326 = vmatprep.subr.msk.mxu1 %vm712_vm1, %v3471_v40  ;;  %v3654_v4 = vld [vmem:[%s4037_s1 + $0x90] sm:$0xff] }
 0x225   :  { %2327 = vmatpush3.xpose.msk.msra.mxu1 %vm712_vm1, %v3476_v21  ;;  %2358 = vmatprep.mubr.msk.f32.mxu1 %vm712_vm1, %v3297_v27  ;;  %4066 = vst [vmem:[#allocation12_spill] sm:$0xff] %v3654_v4 }
 0x226   :  { %2328 = vmatprep.subr.msk.mxu1 %vm712_vm1, %v3481_v23 }
 0x229   :  { %2329 = vmatpush3.xpose.msk.msra.mxu1 %vm712_vm1, %v3495_v25  ;;  %v4081_v25 = vld [vmem:[#allocation11_spill] sm:$0xff] }
 0x22a   :  { %2330 = vmatprep.subr.msk.mxu1 %vm712_vm1, %v3500_v39 }
 0x22d   :  { %2331 = vmatpush3.xpose.msk.msra.mxu1 %vm712_vm1, %v3509_v42 }
 0x22e   :  { %2332 = vmatprep.subr.msk.mxu1 %vm712_vm1, %v3514_v47 }
 0x231   :  { %2333 = vmatpush3.xpose.msk.msra.mxu1 %vm712_vm1, %v3523_v51 }
 0x232   :  { %2334 = vmatprep.subr.msk.mxu1 %vm712_vm1, %v3528_v55 }
 0x235   :  { %2335 = vmatpush3.xpose.msk.msra.mxu1 %vm712_vm1, %v3537_v58 }
 0x236   :  { %2336 = vmatprep.subr.msk.mxu1 %vm712_vm1, %v3542_v60 }
 0x239   :  { %2337 = vmatpush3.xpose.msk.msra.mxu1 %vm712_vm1, %v3551_v62 }
 0x23a   :  { %2338 = vmatprep.subr.msk.mxu1 %vm712_vm1, %v3556_v0 }
 0x23d   :  { %2339 = vmatpush3.xpose.msk.msra.mxu1 %vm712_vm1, %v3565_v6 }
 0x23e   :  { %2340 = vmatprep.subr.msk.mxu1 %vm712_vm1, %v3570_v22 }
 0x241   :  { %2341 = vmatpush3.xpose.msk.msra.mxu1 %vm712_vm1, %v3579_v28 }
 0x242   :  { %2342 = vmatprep.subr.msk.mxu1 %vm712_vm1, %v3584_v29 }
 0x245   :  { %2343 = vmatpush3.xpose.msk.msra.mxu1 %vm712_vm1, %v3593_v31 }
 0x246   :  { %2344 = vmatprep.subr.msk.mxu1 %vm712_vm1, %v3598_v32 }
 0x249   :  { %2345 = vmatpush3.xpose.msk.msra.mxu1 %vm712_vm1, %v3607_v35 }
 0x24a   :  { %2346 = vmatprep.subr.msk.mxu1 %vm712_vm1, %v3612_v37 }
 0x24d   :  { %2347 = vmatpush3.xpose.msk.msra.mxu1 %vm712_vm1, %v3621_v24 }
 0x24e   :  { %2348 = vmatprep.subr.msk.mxu1 %vm712_vm1, %v3626_v18 }
 0x251   :  { %2349 = vmatpush3.xpose.msk.msra.mxu1 %vm712_vm1, %v3635_v16 }
 0x252   :  { %2350 = vmatprep.subr.msk.mxu1 %vm712_vm1, %v3640_v12 }
 0x255   :  { %2351 = vmatpush3.xpose.msk.msra.mxu1 %vm712_vm1, %v3649_v10 }
 0x256   :  { %2352 = vmatprep.subr.msk.mxu1 %vm712_vm1, %v3654_v4  ;;  %v3682_v4 = vld [vmem:[%s4037_s1 + $0x80] sm:$0xff] }
 0x259   :  { %2353 = vmatpush3.xpose.msk.msra.mxu1 %vm712_vm1, %v3663_v19  ;;  %v1170_v19 = vmul.f32 %v3039_v45, %v3476_v21  ;;  %v1184_v45 = vmul.f32 %v3057_v50, %v3500_v39  ;;  %v1167_v50 = vmul.f32 %v3078_v56, %v3523_v51  ;;  %v1181_v56 = vmul.f32 %v3141_v38, %v3542_v60  ;;  %v4080_v21 = vld [vmem:[#allocation10_spill] sm:$0xff] }
 0x25a   :  { %2354 = vmatprep.subr.msk.mxu1 %vm712_vm1, %v3668_v17  ;;  %v3693_v17 = vld [vmem:[%s4037_s1] sm:$0xff]  ;;  %v1164_v38 = vmul.f32 %v3160_v48, %v3565_v6  ;;  %v1178_v48 = vmul.f32 %v3183_v59, %v3584_v29  ;;  %v1161_v59 = vmul.f32 %v3202_v1, %v3607_v35  ;;  %v1159_v1 = vmul.f32 %v3230_v9, %v3635_v16 }
 0x25b   :  { %v1155_v39 = vmul.f32 %v4081_v25, %v3693_v17 }
 0x25d   :  { %2355 = vmatpush3.xpose.msk.msra.mxu1 %vm712_vm1, %v3677_v15  ;;  %v1185_v15 = vmul.f32 %v3041_v46, %v3481_v23  ;;  %v1168_v46 = vmul.f32 %v3067_v53, %v3509_v42  ;;  %v1182_v53 = vmul.f32 %v3127_v34, %v3528_v55  ;;  %v1165_v34 = vmul.f32 %v3146_v41, %v3551_v62 }
 0x25e   :  { %2356 = vmatprep.subr.msk.mxu1 %vm712_vm1, %v3682_v4  ;;  %v1179_v41 = vmul.f32 %v3169_v52, %v3570_v22  ;;  %v1162_v52 = vmul.f32 %v3188_v61, %v3593_v31  ;;  %v1160_v61 = vmul.f32 %v3216_v5, %v3621_v24  ;;  %v1171_v23 = vmul.f32 %v4080_v21, %v3682_v4  ;;  %v1108_v31 = vpop.f32.mrf.mxu0 }
 0x25f   :  { %v4082_v42 = vmov 0.0  }
 0x260   :  { %v1110_v32 = vpop.f32.mrf.mxu0 }
 0x261   :  { %2357 = vmatpush3.xpose.msk.msra.mxu1 %vm712_vm1, %v3693_v17 }
 0x262   :  { %2422 = vmatprep.subr.msk.mxu1 %vm712_vm1, %v1186_v13  ;;  %v4070_v13 = vmov 1.0   ;;  %v1114_v35 = vpop.f32.mrf.mxu0 }
 0x264   :  { %2359 = vmatmul.mubr.msk.f32.vlgmr.msra.gmra.mxu1 %vm712_vm1, %v3297_v27  ;;  %v4072_v27 = vld [vmem:[#allocation12_spill] sm:$0xff] }
 0x265   :  { %2423 = vmatpush3.xpose.msk.msra.mxu1 %vm712_vm1, %v1170_v19  ;;  %2360 = vmatprep.mubr.msk.f32.mxu1 %vm712_vm1, %v3358_v2  ;;  %v4071_v19 = vld [vmem:[#allocation5_spill] sm:$0xff] }
 0x266   :  { %2424 = vmatprep.subr.msk.mxu1 %vm712_vm1, %v1185_v15  ;;  %v1176_v15 = vmul.f32 %v3211_v3, %v3612_v37  ;;  %v1174_v3 = vmul.f32 %v3239_v11, %v3640_v12  ;;  %v1158_v5 = vmul.f32 %v4071_v19, %v3649_v10  ;;  %v1116_v37 = vpop.f32.mrf.mxu0 }
 0x268   :  { %2361 = vmatmul.mubr.msk.f32.gmra.mxu1 %vm712_vm1, %v3358_v2  ;;  %v4073_v2 = vld [vmem:[#allocation6_spill] sm:$0xff]  ;;  %v1120_v24 = vpop.f32.mrf.mxu0 }
 0x269   :  { %2425 = vmatpush3.xpose.msk.msra.mxu1 %vm712_vm1, %v1169_v44  ;;  %2362 = vmatprep.mubr.msk.f32.mxu1 %vm712_vm1, %v3373_v8  ;;  %v1173_v7 = vmul.f32 %v4073_v2, %v4072_v27 }
 0x26a   :  { %2426 = vmatprep.subr.msk.mxu1 %vm712_vm1, %v1184_v45  ;;  %v1122_v18 = vpop.f32.mrf.mxu0 }
 0x26c   :  { %2363 = vmatmul.mubr.msk.f32.gmra.mxu1 %vm712_vm1, %v3373_v8  ;;  %v4074_v8 = vld [vmem:[#allocation13_spill] sm:$0xff]  ;;  %v1126_v16 = vpop.f32.mrf.mxu0 }
 0x26d   :  { %2427 = vmatpush3.xpose.msk.msra.mxu1 %vm712_vm1, %v1168_v46  ;;  %2364 = vmatprep.mubr.msk.f32.mxu1 %vm712_vm1, %v3388_v14 }
 0x26e   :  { %2428 = vmatprep.subr.msk.mxu1 %vm712_vm1, %v1183_v49  ;;  %v3842_v4 = vpop.f32.mrf.mxu0 }
 0x270   :  { %2365 = vmatmul.mubr.msk.f32.gmra.mxu1 %vm712_vm1, %v3388_v14  ;;  %v4075_v14 = vld [vmem:[#allocation7_spill] sm:$0xff]  ;;  %v1132_v46 = vpop.f32.mrf.mxu0 }
 0x271   :  { %2429 = vmatpush3.xpose.msk.msra.mxu1 %vm712_vm1, %v1167_v50  ;;  %2366 = vmatprep.mubr.msk.f32.mxu1 %vm712_vm1, %v3403_v20  ;;  %v1157_v9 = vmul.f32 %v4075_v14, %v4074_v8 }
 0x272   :  { %2430 = vmatprep.subr.msk.mxu1 %vm712_vm1, %v1182_v53  ;;  %v3852_v53 = vpop.f32.mrf.mxu0 }
 0x274   :  { %2367 = vmatmul.mubr.msk.f32.gmra.mxu1 %vm712_vm1, %v3403_v20  ;;  %v4076_v20 = vld [vmem:[#allocation14_spill] sm:$0xff] }
 0x275   :  { %2431 = vmatpush3.xpose.msk.msra.mxu1 %vm712_vm1, %v1166_v54  ;;  %2368 = vmatprep.mubr.msk.f32.mxu1 %vm712_vm1, %v3418_v26 }
 0x276   :  { %2432 = vmatprep.subr.msk.mxu1 %vm712_vm1, %v1181_v56 }
 0x278   :  { %2369 = vmatmul.mubr.msk.f32.gmra.mxu1 %vm712_vm1, %v3418_v26  ;;  %v4077_v26 = vld [vmem:[#allocation8_spill] sm:$0xff] }
 0x279   :  { %2433 = vmatpush3.xpose.msk.msra.mxu1 %vm712_vm1, %v1165_v34  ;;  %2370 = vmatprep.mubr.msk.f32.mxu1 %vm712_vm1, %v3433_v30  ;;  %v1172_v11 = vmul.f32 %v4077_v26, %v4076_v20  ;;  %v1138_v34 = vpop.f32.mrf.mxu0 }
 0x27a   :  { %2434 = vmatprep.subr.msk.mxu1 %vm712_vm1, %v1180_v36 }
 0x27c   :  { %2371 = vmatmul.mubr.msk.f32.gmra.mxu1 %vm712_vm1, %v3433_v30  ;;  %v4078_v30 = vld [vmem:[#allocation15_spill] sm:$0xff] }
 0x27d   :  { %2435 = vmatpush3.xpose.msk.msra.mxu1 %vm712_vm1, %v1164_v38  ;;  %2372 = vmatprep.mubr.msk.f32.mxu1 %vm712_vm1, %v3448_v33 }
 0x27e   :  { %2436 = vmatprep.subr.msk.mxu1 %vm712_vm1, %v1179_v41  ;;  %v3862_v41 = vpop.f32.mrf.mxu0 }
 0x280   :  { %2373 = vmatmul.mubr.msk.f32.gmra.mxu1 %vm712_vm1, %v3448_v33  ;;  %v4079_v33 = vld [vmem:[#allocation9_spill] sm:$0xff] }
 0x281   :  { %2437 = vmatpush3.xpose.msk.msra.mxu1 %vm712_vm1, %v1163_v43  ;;  %2454 = vmatprep.mubr.msk.f32.mxu1 %vm712_vm1, %v4070_v13  ;;  %v1156_v40 = vmul.f32 %v4079_v33, %v4078_v30 }
 0x282   :  { %2438 = vmatprep.subr.msk.mxu1 %vm712_vm1, %v1178_v48 }
 0x285   :  { %2439 = vmatpush3.xpose.msk.msra.mxu1 %vm712_vm1, %v1162_v52 }
 0x286   :  { %2440 = vmatprep.subr.msk.mxu1 %vm712_vm1, %v1177_v57 }
 0x289   :  { %2441 = vmatpush3.xpose.msk.msra.mxu1 %vm712_vm1, %v1161_v59 }
 0x28a   :  { %2442 = vmatprep.subr.msk.mxu1 %vm712_vm1, %v1176_v15 }
 0x28d   :  { %2443 = vmatpush3.xpose.msk.msra.mxu1 %vm712_vm1, %v1160_v61 }
 0x28e   :  { %2444 = vmatprep.subr.msk.mxu1 %vm712_vm1, %v1175_v63 }
 0x291   :  { %2445 = vmatpush3.xpose.msk.msra.mxu1 %vm712_vm1, %v1159_v1 }
 0x292   :  { %2446 = vmatprep.subr.msk.mxu1 %vm712_vm1, %v1174_v3 }
 0x295   :  { %2447 = vmatpush3.xpose.msk.msra.mxu1 %vm712_vm1, %v1158_v5  ;;  %v1694_v5 = vlaneseq }
 0x296   :  { %2448 = vmatprep.subr.msk.mxu1 %vm712_vm1, %v1173_v7 }
 0x297   :  { %v3888_v33 = vshrl.u32 %v1694_v5, 7 }
 0x299   :  { %2449 = vmatpush3.xpose.msk.msra.mxu1 %vm712_vm1, %v1157_v9 }
 0x29a   :  { %2450 = vmatprep.subr.msk.mxu1 %vm712_vm1, %v1172_v11 }
 0x29d   :  { %2451 = vmatpush3.xpose.msk.msra.mxu1 %vm712_vm1, %v1156_v40  ;;  %v1662_v40 = vmul.f32 2.0, %v1108_v31 }
 0x29e   :  { %2452 = vmatprep.subr.msk.mxu1 %vm712_vm1, %v1171_v23 }
 0x2a1   :  { %2453 = vmatpush3.xpose.msk.msra.mxu1 %vm712_vm1, %v1155_v39  ;;  %v1664_v39 = vmul.f32 2.0, %v1114_v35 }
 0x2a4   :  { %2455 = vmatmul.mubr.msk.f32.vlgmr.msra.gmra.mxu1 %vm712_vm1, %v4070_v13  ;;  %v3869_v13 = vpop.f32.mrf.mxu0 }
 0x2a5   :  { %1655 = vmatprep.mubr.f32.mxu1 %v4082_v42 }
 0x2a6   :  { %v3875_v61 = vpop.f32.mrf.mxu0 }
 0x2a8   :  { %v1150_v7 = vpop.f32.mrf.mxu0 }
 0x2aa   :  { %v3892_v42 = vpop.f32.mrf.mxu0 }
 0x2ac   :  { %v1551_v5 = vpop.f32.mrf.mxu0 }
 0x2e4   :  { %v3826_v47 = vpop.f32.mrf.mxu1 }
 0x2e5   :  { %v2128_v51 = vmul.f32 -1.442695, %v3826_v47  ;;  %v575_v43 = vand.u32 2147483647, %v3826_v47  ;;  %vm571_vm4 = vcmp.ne.f32.partialorder %v3826_v47, %v3826_v47 }
 0x2e6   :  { %v3829_v55 = vpop.f32.mrf.mxu1 }
 0x2e7   :  { %2651 = vpow2.f32 %v2128_v51  ;;  %v2129_v17 = vmul.f32 -1.442695, %v3829_v55  ;;  %v577_v57 = vsub.f32 0.0, %v575_v43  ;;  %v576_v25 = vand.u32 2147483647, %v3829_v55 }
 0x2e8   :  { %v1667_v43 = vmul.f32 2.0, %v1122_v18  ;;  %vm572_vm6 = vcmp.ne.f32.partialorder %v3829_v55, %v3829_v55 }
 0x2e9   :  { %2653 = vpow2.f32 %v2129_v17  ;;  %v579_v63 = vmul.f32 1.442695, %v577_v57  ;;  %v1668_v57 = vmul.f32 2.0, %v1126_v16 }
 0x2f4   :  { %v2652_v58 = vpop.eup %2651 }
 0x2f5   :  { %v563_v60 = vadd.f32 1.0, %v2652_v58  ;;  %v1663_v58 = vmul.f32 2.0, %v1110_v32  ;;  %v578_v32 = vsub.f32 0.0, %v576_v25 }
 0x2f6   :  { %v2654_v62 = vpop.eup %2653 }
 0x2f7   :  { %2655 = vrcp.f32 %v563_v60  ;;  %v564_v0 = vadd.f32 1.0, %v2654_v62  ;;  %v3895_v60 = vmul.f32 2.0, %v1116_v37  ;;  %v1680_v37 = vadd.f32 1.0, %v1664_v39 }
 0x2f8   :  { %v1679_v39 = vadd.f32 1.0, %v1663_v58 }
 0x2f9   :  { %2657 = vrcp.f32 %v564_v0 }
 0x2fa   :  { %2659 = vpow2.f32 %v579_v63 }
 0x304   :  { %v3832_v6 = vpop.eup %2655 }
 0x305   :  { %v2057_v22 = vrot.slane %v3832_v6, 7 }
 0x306   :  { %v3835_v28 = vpop.eup %2657 }
 0x307   :  { %2061 = vst [vmem:[#allocation2 + $0x10] sm:$0xe] %v2057_v22  ;;  %v2058_v29 = vrot.slane %v3835_v28, 7  ;;  %v1666_v22 = vmul.f32 2.0, %v1120_v24  ;;  %v1678_v24 = vadd.f32 1.0, %v1662_v40 }
 0x309   :  { %2062 = vst [vmem:[#allocation2 + $0x18] sm:$0xe] %v2058_v29  ;;  %v3899_v29 = vsub.s32 0, %v3888_v33 }
 0x30b   :  { %v1697_v18 = vrot.slane %v1551_v5, %v3899_v29 }
 0x30d   :  { %v1704_v25 = vadd.f32 %v1697_v18, %v1680_v37 }
 0x324   :  { %v3838_v12 = vpop.f32.mrf.mxu1 }
 0x326   :  { %v3840_v10 = vpop.f32.mrf.mxu1 }
 0x328   :  { %v3844_v44 = vpop.f32.mrf.mxu1 }
 0x32a   :  { %v3846_v45 = vpop.f32.mrf.mxu1 }
 0x32b   :  { %v1559_v16 = vmax.f32 %v3846_v45, 0.0 }
 0x32c   :  { %v3848_v49 = vpop.f32.mrf.mxu1 }
 0x32d   :  { %v1560_v63 = vmax.f32 %v3848_v49, 0.0 }
 0x32e   :  { %v3850_v50 = vpop.f32.mrf.mxu1 }
 0x32f   :  { %v1561_v31 = vmax.f32 %v3850_v50, 0.0 }
 0x330   :  { %v3854_v54 = vpop.f32.mrf.mxu1 }
 0x331   :  { %v1562_v62 = vmax.f32 %v3854_v54, 0.0 }
 0x332   :  { %v3856_v56 = vpop.f32.mrf.mxu1 }
 0x333   :  { %v1563_v51 = vmax.f32 %v3856_v56, 0.0 }
 0x334   :  { %v3858_v36 = vpop.f32.mrf.mxu1 }
 0x335   :  { %v1564_v21 = vmax.f32 %v3858_v36, 0.0 }
 0x336   :  { %v3860_v38 = vpop.f32.mrf.mxu1 }
 0x337   :  { %v1565_v26 = vmax.f32 %v3860_v38, 0.0 }
 0x338   :  { %v3865_v48 = vpop.f32.mrf.mxu1 }
 0x339   :  { %v1566_v9 = vmax.f32 %v3865_v48, 0.0  ;;  %v1581_v35 = vmin.f32 %v1565_v26, 1.1  ;;  %v1577_v26 = vmin.f32 %v1561_v31, 1.1 }
 0x33a   :  { %v3867_v52 = vpop.f32.mrf.mxu1 }
 0x33b   :  { %v1567_v8 = vmax.f32 %v3867_v52, 0.0  ;;  %v1582_v0 = vmin.f32 %v1566_v9, 1.1  ;;  %v1578_v9 = vmin.f32 %v1562_v62, 1.1  ;;  %v1556_v62 = vmax.f32 %v3838_v12, 0.0 }
 0x33c   :  { %v3871_v59 = vpop.f32.mrf.mxu1 }
 0x33d   :  { %v1568_v27 = vmax.f32 %v3871_v59, 0.0  ;;  %v1583_v17 = vmin.f32 %v1567_v8, 1.1  ;;  %v1669_v8 = vmul.f32 2.0, %v3842_v4  ;;  %v1557_v4 = vmax.f32 %v3840_v10, 0.0 }
 0x33e   :  { %v3873_v15 = vpop.f32.mrf.mxu1 }
 0x33f   :  { %v1569_v3 = vmax.f32 %v3873_v15, 0.0  ;;  %v1584_v23 = vmin.f32 %v1568_v27, 1.1  ;;  %v1579_v27 = vmin.f32 %v1563_v51, 1.1 }
 0x340   :  { %v3877_v1 = vpop.f32.mrf.mxu1  ;;  %v1573_v37 = vmin.f32 %v1557_v4, 1.1 }
 0x341   :  { %v1570_v19 = vmax.f32 %v3877_v1, 0.0  ;;  %v1585_v11 = vmin.f32 %v1569_v3, 1.1  ;;  %v1580_v3 = vmin.f32 %v1564_v21, 1.1 }
 0x342   :  { %v3882_v2 = vpop.f32.mrf.mxu1  ;;  %v1576_v21 = vmin.f32 %v1560_v63, 1.1 }
 0x343   :  { %v1571_v14 = vmax.f32 %v3882_v2, 0.0  ;;  %v1586_v20 = vmin.f32 %v1570_v19, 1.1  ;;  %v1670_v19 = vmul.f32 2.0, %v1132_v46  ;;  %v1558_v46 = vmax.f32 %v3844_v44, 0.0 }
 0x345   :  { %v1587_v30 = vmin.f32 %v1571_v14, 1.1  ;;  %v1672_v14 = vmul.f32 2.0, %v1138_v34  ;;  %v1686_v40 = vadd.f32 1.0, %v1670_v19  ;;  %v1553_v34 = vpop.f32.mrf.mxu0  ;;  %v1574_v58 = vmin.f32 %v1558_v46, 1.1 }
 0x347   :  { %1607 = vmatprep.subr.mxu1 %v1587_v30  ;;  %v1676_v30 = vmul.f32 2.0, %v1150_v7  ;;  %v1688_v51 = vadd.f32 1.0, %v1672_v14  ;;  %v1671_v7 = vmul.f32 2.0, %v3852_v53  ;;  %v1572_v53 = vmin.f32 %v1556_v62, 1.1 }
 0x348   :  { %1608 = vmatpush1.msra.mxu1 %v1586_v20  ;;  %v1682_v20 = vadd.f32 1.0, %v1666_v22  ;;  %v1673_v22 = vmul.f32 2.0, %v3862_v41  ;;  %v3919_v41 = vld [vmem:[%s4040_s4] sm:$0x7]  ;;  %v1683_v14 = vadd.f32 1.0, %v1667_v43  ;;  %s2811_s4 = smov [#allocation2]  }
 0x349   :  { %1609 = vmatprep.subr.mxu1 %v1585_v11  ;;  %v1684_v11 = vadd.f32 1.0, %v1668_v57  ;;  %v1692_v57 = vadd.f32 1.0, %v1676_v30  ;;  %s2068_s5 = sshll.u32 %s2811_s4, 4  ;;  %s2069_s5 = int_to_ptr.vmem [resolvable:$true] %s2068_s5 }
 0x34a   :  { %1610 = vmatpush1.msra.mxu1 %v1584_v23  ;;  %v581_v23 = vmul.f32 1.442695, %v578_v32  ;;  %v1706_v31 = vadd.f32 %v1697_v18, %v1682_v20  ;;  %v1720_v32 = vmax.f32 %v1704_v25, 1e-10  ;;  %v1702_v20 = vadd.f32 %v1697_v18, %v1678_v24  ;;  %s2787_s23 = scalar_lea.vmem %s2069_s5, 512  ;;  %p2792_p1 = scmp.lt.s32.totalorder %s2069_s5, %s2069_s5 }
 0x34b   :  { %1611 = vmatprep.subr.mxu1 %v1583_v17  ;;  %v1674_v17 = vmul.f32 2.0, %v3869_v13  ;;  %v1708_v63 = vadd.f32 %v1697_v18, %v1684_v11  ;;  %v1710_v13 = vadd.f32 %v1697_v18, %v1686_v40  ;;  %v1677_v11 = vmul.f32 2.0, %v3892_v42  ;;  %p2788_p0 = scmp.ne.s32.totalorder %s2069_s5, %s2787_s23  ;;  %p2793_p2 = scmp.lt.s32.totalorder %s2787_s23, %s2787_s23 }
 0x34c   :  { %1612 = vmatpush1.msra.mxu1 %v1582_v0  ;;  %v3910_v0 = vpop.eup %2659  ;;  %2661 = vpow2.f32 %v581_v23  ;;  %v1716_v30 = vadd.f32 %v1697_v18, %v1692_v57  ;;  %v1689_v43 = vadd.f32 1.0, %v1673_v22  ;;  %v1718_v4 = vmax.f32 %v1702_v20, 1e-10 }
 0x34d   :  { %1613 = vmatprep.subr.mxu1 %v1581_v35  ;;  %v1575_v35 = vmin.f32 %v1559_v16, 1.1  ;;  %v583_v19 = vadd.f32 1.0, %v3910_v0  ;;  %v1690_v5 = vadd.f32 1.0, %v1674_v17  ;;  %v1722_v16 = vmax.f32 %v1706_v31, 1e-10  ;;  %p2794_p3 = por %p2793_p2, %p2792_p1 }
 0x34e   :  { %1614 = vmatpush1.msra.mxu1 %v1580_v3  ;;  %v1701_v3 = vrot.slane %v1553_v34, %v3899_v29  ;;  %v1724_v46 = vmax.f32 %v1708_v63, 1e-10  ;;  %v1726_v23 = vmax.f32 %v1710_v13, 1e-10  ;;  %2663 = vrsqrt.f32 %v1720_v32 }
 0x34f   :  { %1615 = vmatprep.subr.mxu1 %v1579_v27  ;;  %v1712_v27 = vadd.f32 %v1697_v18, %v1688_v51  ;;  %2665 = vlog2.f32 %v583_v19  ;;  %v1714_v25 = vadd.f32 %v1697_v18, %v1690_v5  ;;  %v1693_v34 = vadd.f32 1.0, %v1677_v11  ;;  %p2795_p4 = pnand %p2794_p3, %p2788_p0 }
 0x350   :  { %1616 = vmatpush1.msra.mxu1 %v1578_v9  ;;  %v1675_v9 = vmul.f32 2.0, %v3875_v61  ;;  %v1703_v40 = vadd.f32 %v1701_v3, %v1679_v39  ;;  %2667 = vrsqrt.f32 %v1722_v16  ;;  %v1732_v42 = vmax.f32 %v1716_v30, 1e-10 }
 0x351   :  { %1617 = vmatprep.subr.mxu1 %v1577_v26  ;;  %v1685_v26 = vadd.f32 1.0, %v1669_v8  ;;  %v1728_v61 = vmax.f32 %v1712_v27, 1e-10  ;;  %v1707_v8 = vadd.f32 %v1701_v3, %v1683_v14  ;;  %2669 = vrsqrt.f32 %v1724_v46 }
 0x352   :  { %1618 = vmatpush1.msra.mxu1 %v1576_v21  ;;  %v1687_v21 = vadd.f32 1.0, %v1671_v7  ;;  %v1691_v24 = vadd.f32 1.0, %v1675_v9  ;;  %2671 = vrsqrt.f32 %v1726_v23  ;;  %v1719_v62 = vmax.f32 %v1703_v40, 1e-10 }
 0x353   :  { %1619 = vmatprep.subr.mxu1 %v1575_v35  ;;  %v1709_v51 = vadd.f32 %v1701_v3, %v1685_v26  ;;  %v1730_v7 = vmax.f32 %v1714_v25, 1e-10  ;;  %2673 = vrsqrt.f32 %v1728_v61  ;;  %v1713_v39 = vadd.f32 %v1701_v3, %v1689_v43 }
 0x354   :  { %1620 = vmatpush1.msra.mxu1 %v1574_v58  ;;  %v1711_v17 = vadd.f32 %v1701_v3, %v1687_v21  ;;  %v1681_v31 = vadd.f32 1.0, %v3895_v60  ;;  %2675 = vrsqrt.f32 %v1718_v4  ;;  %v1715_v22 = vadd.f32 %v1701_v3, %v1691_v24 }
 0x355   :  { %1621 = vmatprep.subr.mxu1 %v1573_v37  ;;  %v1723_v18 = vmax.f32 %v1707_v8, 1e-10  ;;  %2677 = vrsqrt.f32 %v1732_v42  ;;  %v1717_v35 = vadd.f32 %v1701_v3, %v1693_v34  ;;  %v1725_v57 = vmax.f32 %v1709_v51, 1e-10 }
 0x356   :  { %1622 = vmatpush1.msra.mxu1 %v1572_v53  ;;  %v1727_v63 = vmax.f32 %v1711_v17, 1e-10  ;;  %2679 = vrsqrt.f32 %v1719_v62  ;;  %v1729_v13 = vmax.f32 %v1713_v39, 1e-10  ;;  %v1705_v32 = vadd.f32 %v1701_v3, %v1681_v31 }
 0x357   :  { %2276 = vmatmul.mubr.msk.f32.vlgmr.msra.gmra.mxu1 %vm328_vm2, %v3919_v41  ;;  %2681 = vrsqrt.f32 %v1730_v7  ;;  %v1731_v37 = vmax.f32 %v1715_v22, 1e-10  ;;  %v586_v19 = vmul.f32 -0.5, %v3910_v0  ;;  %v1733_v5 = vmax.f32 %v1717_v35, 1e-10 }
 0x358   :  { %2683 = vrsqrt.f32 %v1723_v18  ;;  %v1721_v9 = vmax.f32 %v1705_v32, 1e-10  ;;  %v589_v26 = vand.u32 2147483647, %v3910_v0  ;;  %v569_v35 = vmax.f32 %v3826_v47, 0.0 }
 0x359   :  { %v3926_v58 = vpop.eup %2661  ;;  %2685 = vrsqrt.f32 %v1725_v57  ;;  %v587_v3 = vadd.f32 1.0, %v586_v19 }
 0x35a   :  { %v592_v60 = vadd.f32 1.0, %v3926_v58  ;;  %2687 = vrsqrt.f32 %v1727_v63  ;;  %vm3951_vm3 = vcmp.lt.f32.partialorder %v589_v26, 0.0004427343 }
 0x35b   :  { %v2664_v53 = vpop.eup %2663  ;;  %2689 = vrsqrt.f32 %v1729_v13 }
 0x35c   :  { %v2666_v14 = vpop.eup %2665  ;;  %2691 = vrsqrt.f32 %v1731_v37 }
 0x35d   :  { %v2668_v16 = vpop.eup %2667  ;;  %2693 = vrsqrt.f32 %v1733_v5  ;;  %v585_v40 = vmul.f32 0.6931472, %v2666_v14 }
 0x35e   :  { %v2670_v11 = vpop.eup %2669  ;;  %2695 = vlog2.f32 %v592_v60 }
 0x35f   :  { %v2672_v23 = vpop.eup %2671  ;;  %2697 = vrsqrt.f32 %v1721_v9 }
 0x360   :  { %v2674_v24 = vpop.eup %2673 }
 0x364   :  { %v1352_v27 = vpop.f32.mrf.mxu1 }
 0x365   :  { %v3931_v20 = vrot.slane %v1352_v27, %v3899_v29 }
 0x366   :  { %v1354_v51 = vpop.f32.mrf.mxu1 }
 0x367   :  { %v1760_v30 = vadd.f32 %v3931_v20, %v3844_v44  ;;  %v1762_v46 = vadd.f32 %v3931_v20, %v3848_v49  ;;  %v1764_v21 = vadd.f32 %v3931_v20, %v3854_v54  ;;  %v1766_v43 = vadd.f32 %v3931_v20, %v3858_v36  ;;  %v3946_v49 = vpop.eup %2675 }
 0x368   :  { %v1768_v25 = vadd.f32 %v3931_v20, %v3865_v48  ;;  %v1772_v61 = vadd.f32 %v3931_v20, %v3877_v1  ;;  %v588_v54 = vmul.f32 %v3910_v0, %v587_v3  ;;  %v1770_v34 = vadd.f32 %v3931_v20, %v3871_v59  ;;  %v2678_v17 = vpop.eup %2677 }
 0x369   :  { %v1776_v44 = vmul.f32 %v2664_v53, %v1760_v30  ;;  %v1778_v4 = vmul.f32 %v2668_v16, %v1762_v46  ;;  %v1780_v8 = vmul.f32 %v2670_v11, %v1764_v21  ;;  %v1782_v42 = vmul.f32 %v2672_v23, %v1766_v43  ;;  %v3955_v39 = vpop.eup %2679 }
 0x36a   :  { %v1784_v36 = vmul.f32 %v2674_v24, %v1768_v25  ;;  %v591_v31 = vsel %vm3951_vm3, %v588_v54, %v585_v40  ;;  %v1788_v0 = vmul.f32 %v2678_v17, %v1772_v61  ;;  %v2682_v59 = vpop.eup %2681  ;;  %v1757_v13 = vrot.slane %v1354_v51, %v3899_v29 }
 0x36b   :  { %v1792_v1 = vmax.f32 %v1776_v44, 0.0  ;;  %v1794_v62 = vmax.f32 %v1778_v4, 0.0  ;;  %v1796_v7 = vmax.f32 %v1780_v8, 0.0  ;;  %v1798_v22 = vmax.f32 %v1782_v42, 0.0  ;;  %v2684_v32 = vpop.eup %2683 }
 0x36c   :  { %v1800_v18 = vmax.f32 %v1784_v36, 0.0  ;;  %v1786_v37 = vmul.f32 %v2682_v59, %v1770_v34  ;;  %v2686_v5 = vpop.eup %2685  ;;  %v601_v60 = vadd.f32 %v591_v31, %v569_v35  ;;  %v595_v53 = vmul.f32 -0.5, %v3926_v58 }
 0x36d   :  { %v1808_v57 = vmin.f32 %v1792_v1, 1.1  ;;  %v1810_v63 = vmin.f32 %v1794_v62, 1.1  ;;  %v1812_v19 = vmin.f32 %v1796_v7, 1.1  ;;  %v2688_v14 = vpop.eup %2687  ;;  %v1765_v3 = vadd.f32 %v1757_v13, %v3856_v56 }
 0x36e   :  { %v1814_v27 = vmin.f32 %v1798_v22, 1.1  ;;  %v1804_v9 = vmax.f32 %v1788_v0, 0.0  ;;  %v1816_v16 = vmin.f32 %v1800_v18, 1.1  ;;  %v2690_v26 = vpop.eup %2689  ;;  %v1767_v29 = vadd.f32 %v1757_v13, %v3860_v38 }
 0x36f   :  { %2699 = vlog2.f32 %v1808_v57  ;;  %v1769_v11 = vadd.f32 %v1757_v13, %v3867_v52  ;;  %v1771_v30 = vadd.f32 %v1757_v13, %v3873_v15  ;;  %v2692_v46 = vpop.eup %2691  ;;  %v1802_v21 = vmax.f32 %v1786_v37, 0.0 }
 0x370   :  { %2701 = vlog2.f32 %v1810_v63  ;;  %v1763_v23 = vadd.f32 %v1757_v13, %v3850_v50  ;;  %v1773_v40 = vadd.f32 %v1757_v13, %v3882_v2  ;;  %v2694_v43 = vpop.eup %2693  ;;  %v1761_v25 = vadd.f32 %v1757_v13, %v3846_v45 }
 0x371   :  { %2703 = vlog2.f32 %v1812_v19  ;;  %v1781_v56 = vmul.f32 %v2686_v5, %v1765_v3  ;;  %v1783_v61 = vmul.f32 %v2688_v14, %v1767_v29  ;;  %v2696_v24 = vpop.eup %2695  ;;  %v1785_v38 = vmul.f32 %v2690_v26, %v1769_v11 }
 0x372   :  { %2705 = vlog2.f32 %v1814_v27  ;;  %v1787_v44 = vmul.f32 %v2692_v46, %v1771_v30  ;;  %v1789_v52 = vmul.f32 %v2694_v43, %v1773_v40  ;;  %v603_v15 = vsel %vm571_vm4, %v3826_v47, %v601_v60  ;;  %v2698_v8 = vpop.eup %2697 }
 0x373   :  { %2707 = vlog2.f32 %v1816_v16  ;;  %v596_v4 = vadd.f32 1.0, %v595_v53  ;;  %v1820_v50 = vmin.f32 %v1804_v9, 1.1  ;;  %v1759_v2 = vadd.f32 %v1757_v13, %v3840_v10 }
 0x374   :  { %v1779_v54 = vmul.f32 %v2684_v32, %v1763_v23  ;;  %v1797_v34 = vmax.f32 %v1781_v56, 0.0  ;;  %v1799_v45 = vmax.f32 %v1783_v61, 0.0  ;;  %v1801_v42 = vmax.f32 %v1785_v38, 0.0 }
 0x375   :  { %v598_v36 = vand.u32 2147483647, %v3926_v58  ;;  %v1758_v51 = vadd.f32 %v3931_v20, %v3838_v12  ;;  %v1818_v17 = vmin.f32 %v1802_v21, 1.1  ;;  %v1803_v48 = vmax.f32 %v1787_v44, 0.0 }
 0x376   :  { %v594_v1 = vmul.f32 0.6931472, %v2696_v24  ;;  %v1777_v62 = vmul.f32 %v2698_v8, %v1761_v25  ;;  %v1805_v7 = vmax.f32 %v1789_v52, 0.0  ;;  %v1813_v47 = vmin.f32 %v1797_v34, 1.1 }
 0x377   :  { %v605_v31 = vadd.f32 1.0, %v603_v15  ;;  %v1856_v0 = vsub.s32 4, %v3888_v33  ;;  %2709 = vlog2.f32 %v1820_v50  ;;  %v1815_v10 = vmin.f32 %v1799_v45, 1.1 }
 0x378   :  { %v597_v22 = vmul.f32 %v3926_v58, %v596_v4  ;;  %v1775_v18 = vmul.f32 %v3955_v39, %v1759_v2  ;;  %v1795_v59 = vmax.f32 %v1779_v54, 0.0  ;;  %v1817_v35 = vmin.f32 %v1801_v42, 1.1 }
 0x379   :  { %vm3982_vm5 = vcmp.lt.f32.partialorder %v598_v36, 0.0004427343  ;;  %v1774_v12 = vmul.f32 %v3946_v49, %v1758_v51  ;;  %2711 = vlog2.f32 %v1818_v17  ;;  %v1819_v20 = vmin.f32 %v1803_v48, 1.1 }
 0x37a   :  { %v600_v63 = vsel %vm3982_vm5, %v597_v22, %v594_v1  ;;  %v1793_v13 = vmax.f32 %v1777_v62, 0.0  ;;  %v1821_v32 = vmin.f32 %v1805_v7, 1.1  ;;  %2713 = vlog2.f32 %v1813_v47 }
 0x37b   :  { %v3989_v58 = vrot.slane %v605_v31, %v1856_v0  ;;  %v570_v39 = vmax.f32 %v3829_v55, 0.0  ;;  %2715 = vlog2.f32 %v1815_v10  ;;  %v1791_v60 = vmax.f32 %v1775_v18, 0.0 }
 0x37c   :  { %v2700_v37 = vpop.eup %2699  ;;  %v1811_v53 = vmin.f32 %v1795_v59, 1.1  ;;  %2717 = vlog2.f32 %v1817_v35  ;;  %v1790_v14 = vmax.f32 %v1774_v12, 0.0  ;;  %v1809_v29 = vmin.f32 %v1793_v13, 1.1 }
 0x37d   :  { %v2702_v19 = vpop.eup %2701  ;;  %v1827_v5 = vmul.f32 0.6931472, %v2700_v37  ;;  %v602_v27 = vadd.f32 %v600_v63, %v570_v39  ;;  %2719 = vlog2.f32 %v1819_v20  ;;  %v1807_v40 = vmin.f32 %v1791_v60, 1.1 }
 0x37e   :  { %v2704_v49 = vpop.eup %2703  ;;  %v1831_v9 = vmul.f32 0.6931472, %v2702_v19  ;;  %2721 = vlog2.f32 %v1821_v32  ;;  %v1806_v25 = vmin.f32 %v1790_v14, 1.1 }
 0x37f   :  { %v2706_v16 = vpop.eup %2705  ;;  %v1835_v3 = vmul.f32 0.6931472, %v2704_v49  ;;  %v3993_v26 = vmul.f32 %v3989_v58, %v1827_v5  ;;  %2723 = vlog2.f32 %v1811_v53  ;;  %v604_v43 = vsel %vm572_vm6, %v3829_v55, %v602_v27 }
 0x380   :  { %v2708_v11 = vpop.eup %2707  ;;  %v1839_v30 = vmul.f32 0.6931472, %v2706_v16  ;;  %v3998_v46 = vmul.f32 %v3989_v58, %v1831_v9  ;;  %2725 = vlog2.f32 %v1809_v29  ;;  %v606_v38 = vadd.f32 1.0, %v604_v43 }
 0x381   :  { %v1843_v21 = vmul.f32 0.6931472, %v2708_v11  ;;  %v1868_v23 = vmul.f32 %v3989_v58, %v1835_v3  ;;  %2727 = vlog2.f32 %v1807_v40  ;;  %v1882_v11 = vmul.f32 1.442695, %v3993_v26 }
 0x382   :  { %v1870_v56 = vmul.f32 %v3989_v58, %v1839_v30  ;;  %2729 = vlog2.f32 %v1806_v25  ;;  %v1861_v50 = vrot.slane %v606_v38, %v1856_v0  ;;  %v1886_v3 = vmul.f32 1.442695, %v3998_v46 }
 0x383   :  { %v1872_v61 = vmul.f32 %v3989_v58, %v1843_v21  ;;  %v1890_v27 = vmul.f32 1.442695, %v1868_v23 }
 0x384   :  { %v2710_v24 = vpop.eup %2709  ;;  %v1894_v60 = vmul.f32 1.442695, %v1870_v56 }
 0x385   :  { %v1851_v15 = vmul.f32 0.6931472, %v2710_v24  ;;  %v1898_v32 = vmul.f32 1.442695, %v1872_v61 }
 0x386   :  { %v2712_v44 = vpop.eup %2711 }
 0x387   :  { %v2714_v52 = vpop.eup %2713  ;;  %v1847_v54 = vmul.f32 0.6931472, %v2712_v44  ;;  %v1876_v51 = vmul.f32 %v3989_v58, %v1851_v15 }
 0x388   :  { %v2716_v4 = vpop.eup %2715  ;;  %v1837_v2 = vmul.f32 0.6931472, %v2714_v52 }
 0x389   :  { %v2718_v8 = vpop.eup %2717  ;;  %v1841_v34 = vmul.f32 0.6931472, %v2716_v4  ;;  %v1874_v47 = vmul.f32 %v3989_v58, %v1847_v54  ;;  %v1906_v22 = vmul.f32 1.442695, %v1876_v51 }
 0x38a   :  { %v2720_v55 = vpop.eup %2719  ;;  %v1845_v45 = vmul.f32 0.6931472, %v2718_v8  ;;  %v1869_v42 = vmul.f32 %v1861_v50, %v1837_v2 }
 0x38b   :  { %v2722_v36 = vpop.eup %2721  ;;  %v1849_v17 = vmul.f32 0.6931472, %v2720_v55  ;;  %v1871_v48 = vmul.f32 %v1861_v50, %v1841_v34  ;;  %v1902_v12 = vmul.f32 1.442695, %v1874_v47 }
 0x38c   :  { %v1853_v1 = vmul.f32 0.6931472, %v2722_v36  ;;  %v1873_v62 = vmul.f32 %v1861_v50, %v1845_v45  ;;  %v2724_v7 = vpop.eup %2723  ;;  %v1892_v53 = vmul.f32 1.442695, %v1869_v42 }
 0x38d   :  { %v1875_v31 = vmul.f32 %v1861_v50, %v1849_v17  ;;  %v2726_v0 = vpop.eup %2725  ;;  %v1833_v35 = vmul.f32 0.6931472, %v2724_v7  ;;  %v1896_v37 = vmul.f32 1.442695, %v1871_v48 }
 0x38e   :  { %v1877_v10 = vmul.f32 %v1861_v50, %v1853_v1  ;;  %v2728_v57 = vpop.eup %2727  ;;  %v1900_v63 = vmul.f32 1.442695, %v1873_v62  ;;  %v1829_v13 = vmul.f32 0.6931472, %v2726_v0 }
 0x38f   :  { %v1904_v59 = vmul.f32 1.442695, %v1875_v31  ;;  %v2730_v20 = vpop.eup %2729  ;;  %v1867_v39 = vmul.f32 %v1861_v50, %v1833_v35  ;;  %v1825_v19 = vmul.f32 0.6931472, %v2728_v57 }
 0x390   :  { %v1908_v18 = vmul.f32 1.442695, %v1877_v10  ;;  %v1823_v5 = vmul.f32 0.6931472, %v2730_v20  ;;  %v1865_v49 = vmul.f32 %v1861_v50, %v1829_v13 }
 0x391   :  { %v1888_v14 = vmul.f32 1.442695, %v1867_v39  ;;  %v1863_v9 = vmul.f32 %v1861_v50, %v1825_v19 }
 0x392   :  { %2731 = vpow2.f32 %v1908_v18  ;;  %v1862_v16 = vmul.f32 %v3989_v58, %v1823_v5  ;;  %v1884_v29 = vmul.f32 1.442695, %v1865_v49 }
 0x393   :  { %2733 = vpow2.f32 %v1906_v22  ;;  %v1880_v30 = vmul.f32 1.442695, %v1863_v9 }
 0x394   :  { %2735 = vpow2.f32 %v1904_v59  ;;  %v1878_v21 = vmul.f32 1.442695, %v1862_v16 }
 0x395   :  { %2737 = vpow2.f32 %v1902_v12 }
 0x396   :  { %2739 = vpow2.f32 %v1900_v63 }
 0x397   :  { %2741 = vpow2.f32 %v1898_v32 }
 0x398   :  { %2743 = vpow2.f32 %v1896_v37 }
 0x399   :  { %2745 = vpow2.f32 %v1894_v60 }
 0x39a   :  { %2747 = vpow2.f32 %v1892_v53  ;;  %v1985_v53 = vsub.s32 3, %v3888_v33 }
 0x39b   :  { %2749 = vpow2.f32 %v1890_v27 }
 0x39c   :  { %2751 = vpow2.f32 %v1888_v14  ;;  %v1986_v49 = vrot.slane %v3832_v6, %v1985_v53  ;;  %v1990_v9 = vrot.slane %v3835_v28, %v1985_v53 }
 0x39d   :  { %2753 = vpow2.f32 %v1886_v3 }
 0x39e   :  { %2755 = vpow2.f32 %v1884_v29 }
 0x39f   :  { %v2732_v23 = vpop.eup %2731  ;;  %2757 = vpow2.f32 %v1882_v11 }
 0x3a0   :  { %v2734_v40 = vpop.eup %2733  ;;  %1926 = vmatprep.subr.mxu0 %v2732_v23  ;;  %2759 = vpow2.f32 %v1880_v30 }
 0x3a1   :  { %v2736_v43 = vpop.eup %2735  ;;  %2761 = vpow2.f32 %v1878_v21  ;;  %1927 = vmatpush1.msra.mxu0 %v2734_v40 }
 0x3a2   :  { %v2738_v58 = vpop.eup %2737  ;;  %1928 = vmatprep.subr.mxu0 %v2736_v43 }
 0x3a3   :  { %v2740_v46 = vpop.eup %2739  ;;  %1929 = vmatpush1.msra.mxu0 %v2738_v58 }
 0x3a4   :  { %v2742_v25 = vpop.eup %2741  ;;  %1930 = vmatprep.subr.mxu0 %v2740_v46 }
 0x3a5   :  { %v2744_v26 = vpop.eup %2743  ;;  %1931 = vmatpush1.msra.mxu0 %v2742_v25 }
 0x3a6   :  { %v2746_v56 = vpop.eup %2745  ;;  %1932 = vmatprep.subr.mxu0 %v2744_v26 }
 0x3a7   :  { %v2748_v61 = vpop.eup %2747  ;;  %1933 = vmatpush1.msra.mxu0 %v2746_v56 }
 0x3a8   :  { %v2750_v24 = vpop.eup %2749  ;;  %1934 = vmatprep.subr.mxu0 %v2748_v61 }
 0x3a9   :  { %v2752_v38 = vpop.eup %2751  ;;  %1935 = vmatpush1.msra.mxu0 %v2750_v24 }
 0x3aa   :  { %v2754_v44 = vpop.eup %2753  ;;  %1936 = vmatprep.subr.mxu0 %v2752_v38 }
 0x3ab   :  { %v2756_v52 = vpop.eup %2755  ;;  %1937 = vmatpush1.msra.mxu0 %v2754_v44 }
 0x3ac   :  { %v2758_v15 = vpop.eup %2757  ;;  %1938 = vmatprep.subr.mxu0 %v2756_v52 }
 0x3ad   :  { %v2760_v4 = vpop.eup %2759  ;;  %1939 = vmatpush1.msra.mxu0 %v2758_v15 }
 0x3ae   :  { %v2762_v50 = vpop.eup %2761  ;;  %1940 = vmatprep.subr.mxu0 %v2760_v4 }
 0x3af   :  { %1941 = vmatpush1.msra.mxu0 %v2762_v50 }
 0x3b0   :  { %2277 = vmatmul.mubr.msk.f32.vlgmr.msra.gmra.mxu0 %vm328_vm2, %v3919_v41 }
 0x417   :  { %v1657_v2 = vpop.f32.mrf.mxu1 }
 0x418   :  { %v1981_v8 = vmul.f32 %v3832_v6, %v1657_v2 }
 0x419   :  { %v1659_v54 = vpop.f32.mrf.mxu1 }
 0x41a   :  { %v2031_v34 = vmax.f32 %v1981_v8, 0.0  ;;  %v1982_v55 = vmul.f32 %v3835_v28, %v1659_v54 }
 0x41c   :  { %v2033_v45 = vmin.f32 %v2031_v34, 1.0  ;;  %v2032_v42 = vmax.f32 %v1982_v55, 0.0 }
 0x41e   :  { %v2035_v36 = vand.u32 2147483647, %v2033_v45  ;;  %v2034_v51 = vmin.f32 %v2032_v42, 1.0 }
 0x420   :  { %vm2037_vm7 = vcmp.le.f32.partialorder %v2035_v36, 1e-06  ;;  %v2036_v17 = vand.u32 2147483647, %v2034_v51 }
 0x421   :  { %v2039_v48 = vsel %vm2037_vm7, 1e-06, %v2033_v45 }
 0x422   :  { %v2041_v1 = vmax.f32 %v2039_v48, 0.0  ;;  %vm2038_vm8 = vcmp.le.f32.partialorder %v2036_v17, 1e-06 }
 0x423   :  { %v2040_v62 = vsel %vm2038_vm8, 1e-06, %v2034_v51 }
 0x424   :  { %v2598_v7 = vand.u32 2147483647, %v2041_v1  ;;  %v2042_v47 = vmax.f32 %v2040_v62, 0.0  ;;  %vm2602_vm9 = vcmp.lt.f32.partialorder %v2041_v1, 0  ;;  %vm2603_vm10 = vcmp.eq.f32.partialorder %v2041_v1, 0 }
 0x425   :  { %vm2615_vm12 = vcmp.ne.f32.partialorder %v2041_v1, %v2041_v1  ;;  %vm2604_vm14 = vcmp.eq.f32.partialorder %v2041_v1, 1065353216 }
 0x426   :  { %2763 = vlog2.f32 %v2598_v7  ;;  %v2624_v41 = vand.u32 2147483647, %v2042_v47  ;;  %vm2607_vm11 = vcmp.eq.f32.partialorder %v2598_v7, 2139095040  ;;  %vm2628_vm13 = vcmp.lt.f32.partialorder %v2042_v47, 0 }
 0x427   :  { %vm2629_vm15 = vcmp.eq.f32.partialorder %v2042_v47, 0  ;;  %vm2641_vm1 = vcmp.ne.f32.partialorder %v2042_v47, %v2042_v47  ;;  %vm2630_vm2 = vcmp.eq.f32.partialorder %v2042_v47, 1065353216 }
 0x428   :  { %2765 = vlog2.f32 %v2624_v41  ;;  %vm2633_vm0 = vcmp.eq.f32.partialorder %v2624_v41, 2139095040 }
 0x433   :  { %v2764_v31 = vpop.eup %2763 }
 0x434   :  { %v2600_v10 = vmul.f32 0.41666666, %v2764_v31 }
 0x435   :  { %v2766_v0 = vpop.eup %2765 }
 0x436   :  { %2767 = vpow2.f32 %v2600_v10  ;;  %v2626_v22 = vmul.f32 0.41666666, %v2766_v0 }
 0x438   :  { %2769 = vpow2.f32 %v2626_v22 }
 0x443   :  { %v2768_v18 = vpop.eup %2767 }
 0x444   :  { %v2608_v59 = vsel %vm2602_vm9, 2143289344, %v2768_v18 }
 0x445   :  { %v2609_v35 = vsel %vm2603_vm10, 0, %v2608_v59  ;;  %v2770_v57 = vpop.eup %2769 }
 0x446   :  { %v2614_v12 = vsel %vm2607_vm11, 2139095040, %v2609_v35  ;;  %v2634_v63 = vsel %vm2628_vm13, 2143289344, %v2770_v57 }
 0x447   :  { %v2618_v20 = vsel %vm2615_vm12, 2143289344, %v2614_v12  ;;  %v2635_v32 = vsel %vm2629_vm15, 0, %v2634_v63 }
 0x448   :  { %v2619_v13 = vsel %vm2604_vm14, 1065353216, %v2618_v20  ;;  %v2640_v39 = vsel %vm2633_vm0, 2139095040, %v2635_v32 }
 0x449   :  { %v2047_v37 = vrot.slane %v2619_v13, 2  ;;  %v2644_v19 = vsel %vm2641_vm1, 2143289344, %v2640_v39 }
 0x44a   :  { %v2645_v5 = vsel %vm2630_vm2, 1065353216, %v2644_v19 }
 0x44b   :  { %2051 = vst [vmem:[#allocation2 + $0x10] ss:$-12 sps:$4 sm:$0xc1] %v2047_v37   ;;  %v2048_v60 = vrot.slane %v2645_v5, 2 }
 0x44d   :  { %2052 = vst [vmem:[#allocation2 + $0x18] ss:$-12 sps:$4 sm:$0xc1] %v2048_v60  }
 0x470   :  { %v1976_v27 = vpop.f32.mrf.mxu0 }
 0x471   :  { %v1991_v14 = vmul.f32 %v1986_v49, %v1976_v27 }
 0x472   :  { %v1978_v16 = vpop.f32.mrf.mxu0 }
 0x473   :  { %v1993_v3 = vadd.f32 %v1991_v14, %v1981_v8  ;;  %v2009_v29 = vmax.f32 %v1991_v14, 0.0  ;;  %v1992_v11 = vmul.f32 %v1990_v9, %v1978_v16 }
 0x475   :  { %v1995_v30 = vmax.f32 %v1993_v3, 0.0  ;;  %v2011_v21 = vmin.f32 %v2009_v29, 1.0  ;;  %v1994_v23 = vadd.f32 %v1992_v11, %v1982_v55  ;;  %v2010_v40 = vmax.f32 %v1992_v11, 0.0 }
 0x477   :  { %v1997_v43 = vand.u32 2147483647, %v1995_v30  ;;  %v2013_v58 = vand.u32 2147483647, %v2011_v21  ;;  %v1996_v46 = vmax.f32 %v1994_v23, 0.0  ;;  %v2012_v25 = vmin.f32 %v2010_v40, 1.0 }
 0x479   :  { %vm1999_vm3 = vcmp.le.f32.partialorder %v1997_v43, 1e-06  ;;  %vm2015_vm4 = vcmp.le.f32.partialorder %v2013_v58, 1e-06  ;;  %v1998_v33 = vand.u32 2147483647, %v1996_v46 }
 0x47a   :  { %v2001_v6 = vsel %vm1999_vm3, 1e-06, %v1995_v30  ;;  %v2017_v26 = vsel %vm2015_vm4, 1e-06, %v2011_v21  ;;  %v2014_v56 = vand.u32 2147483647, %v2012_v25 }
 0x47b   :  { %v2003_v61 = vmax.f32 %v2001_v6, 0.0  ;;  %v2019_v28 = vmax.f32 %v2017_v26, 0.0  ;;  %vm2000_vm5 = vcmp.le.f32.partialorder %v1998_v33, 1e-06 }
 0x47c   :  { %v2002_v38 = vsel %vm2000_vm5, 1e-06, %v1996_v46  ;;  %vm2016_vm6 = vcmp.le.f32.partialorder %v2014_v56, 1e-06 }
 0x47d   :  { %v2494_v24 = vand.u32 2147483647, %v2003_v61  ;;  %v2546_v44 = vand.u32 2147483647, %v2019_v28  ;;  %v4016_v52 = vmax.f32 %v2002_v38, 0.0  ;;  %vm2498_vm7 = vcmp.lt.f32.partialorder %v2003_v61, 0 }
 0x47e   :  { %v2018_v15 = vsel %vm2016_vm6, 1e-06, %v2012_v25  ;;  %vm2499_vm8 = vcmp.eq.f32.partialorder %v2003_v61, 0  ;;  %vm2500_vm9 = vcmp.eq.f32.partialorder %v2003_v61, 1065353216  ;;  %vm2550_vm10 = vcmp.lt.f32.partialorder %v2019_v28, 0 }
 0x47f   :  { %2771 = vlog2.f32 %v2494_v24  ;;  %v4018_v4 = vmax.f32 %v2018_v15, 0.0  ;;  %v2520_v50 = vand.u32 2147483647, %v4016_v52  ;;  %vm2503_vm11 = vcmp.eq.f32.partialorder %v2494_v24, 2139095040 }
 0x480   :  { %2773 = vlog2.f32 %v2546_v44  ;;  %vm2551_vm12 = vcmp.eq.f32.partialorder %v2019_v28, 0  ;;  %vm2511_vm13 = vcmp.ne.f32.partialorder %v2003_v61, %v2003_v61  ;;  %vm2555_vm14 = vcmp.eq.f32.partialorder %v2546_v44, 2139095040 }
 0x481   :  { %v2572_v2 = vand.u32 2147483647, %v4018_v4  ;;  %2775 = vlog2.f32 %v2520_v50  ;;  %vm2552_vm15 = vcmp.eq.f32.partialorder %v2019_v28, 1065353216  ;;  %vm2563_vm0 = vcmp.ne.f32.partialorder %v2019_v28, %v2019_v28 }
 0x482   :  { %vm2524_vm1 = vcmp.lt.f32.partialorder %v4016_v52, 0  ;;  %vm2525_vm2 = vcmp.eq.f32.partialorder %v4016_v52, 0  ;;  %vm2576_vm3 = vcmp.lt.f32.partialorder %v4018_v4, 0  ;;  %vm2577_vm4 = vcmp.eq.f32.partialorder %v4018_v4, 0 }
 0x483   :  { %2777 = vlog2.f32 %v2572_v2  ;;  %vm2529_vm5 = vcmp.eq.f32.partialorder %v2520_v50, 2139095040  ;;  %vm2537_vm6 = vcmp.ne.f32.partialorder %v4016_v52, %v4016_v52 }
 0x48c   :  { %v2772_v8 = vpop.eup %2771 }
 0x48d   :  { %v2774_v54 = vpop.eup %2773  ;;  %v2496_v34 = vmul.f32 0.41666666, %v2772_v8 }
 0x48e   :  { %v2548_v55 = vmul.f32 0.41666666, %v2774_v54  ;;  %v2776_v45 = vpop.eup %2775 }
 0x48f   :  { %2779 = vpow2.f32 %v2496_v34  ;;  %v2522_v36 = vmul.f32 0.41666666, %v2776_v45 }
 0x490   :  { %2781 = vpow2.f32 %v2548_v55  ;;  %v2778_v42 = vpop.eup %2777 }
 0x491   :  { %v2574_v51 = vmul.f32 0.41666666, %v2778_v42  ;;  %2783 = vpow2.f32 %v2522_v36 }
 0x493   :  { %2785 = vpow2.f32 %v2574_v51 }
 0x49c   :  { %v2780_v17 = vpop.eup %2779 }
 0x49d   :  { %v2782_v48 = vpop.eup %2781  ;;  %v2504_v1 = vsel %vm2498_vm7, 2143289344, %v2780_v17  ;;  %vm2581_vm7 = vcmp.eq.f32.partialorder %v2572_v2, 2139095040 }
 0x49e   :  { %v2505_v62 = vsel %vm2499_vm8, 0, %v2504_v1  ;;  %v2556_v7 = vsel %vm2550_vm10, 2143289344, %v2782_v48  ;;  %v2784_v0 = vpop.eup %2783  ;;  %vm2526_vm8 = vcmp.eq.f32.partialorder %v4016_v52, 1065353216  ;;  %vm2578_vm10 = vcmp.eq.f32.partialorder %v4018_v4, 1065353216 }
 0x49f   :  { %v2510_v47 = vsel %vm2503_vm11, 2139095040, %v2505_v62  ;;  %v2557_v41 = vsel %vm2551_vm12, 0, %v2556_v7  ;;  %v2530_v57 = vsel %vm2524_vm1, 2143289344, %v2784_v0 }
 0x4a0   :  { %v2514_v31 = vsel %vm2511_vm13, 2143289344, %v2510_v47  ;;  %v2562_v10 = vsel %vm2555_vm14, 2139095040, %v2557_v41  ;;  %v2786_v59 = vpop.eup %2785  ;;  %v2531_v20 = vsel %vm2525_vm2, 0, %v2530_v57 }
 0x4a1   :  { %v2515_v22 = vsel %vm2500_vm9, 1065353216, %v2514_v31  ;;  %v2566_v18 = vsel %vm2563_vm0, 2143289344, %v2562_v10  ;;  %v2582_v63 = vsel %vm2576_vm3, 2143289344, %v2786_v59  ;;  %v2536_v13 = vsel %vm2529_vm5, 2139095040, %v2531_v20 }
 0x4a2   :  { %2007 = vst [vmem:[#allocation2] sm:$0x7] %v2515_v22  ;;  %v2567_v35 = vsel %vm2552_vm15, 1065353216, %v2566_v18  ;;  %v2583_v32 = vsel %vm2577_vm4, 0, %v2582_v63  ;;  %v2540_v37 = vsel %vm2537_vm6, 2143289344, %v2536_v13  ;;  %vm2589_vm9 = vcmp.ne.f32.partialorder %v4018_v4, %v4018_v4 }
 0x4a3   :  { %v2025_v12 = vrot.slane %v2567_v35, 5  ;;  %v2588_v39 = vsel %vm2581_vm7, 2139095040, %v2583_v32  ;;  %v2541_v19 = vsel %vm2526_vm8, 1065353216, %v2540_v37 }
 0x4a4   :  { %v2592_v5 = vsel %vm2589_vm9, 2143289344, %v2588_v39  ;;  %2008 = vst [vmem:[#allocation2 + $0x8] sm:$0x7] %v2541_v19 }
 0x4a5   :  { %2029 = vst [vmem:[#allocation2] sm:$0x38] %v2025_v12  ;;  %v2593_v60 = vsel %vm2578_vm10, 1065353216, %v2592_v5 }
 0x4a6   :  { %v2026_v53 = vrot.slane %v2593_v60, 5 }
 0x4a8   :  { %2030 = vst [vmem:[#allocation2 + $0x8] sm:$0x38] %v2026_v53 }
 0x4a9   :  { %2798 = shalt.err (!%p2795_p4)
}
 0x4aa   :  { %s2812_s24 = smov 256   ;;  %s2813_s2 = smov 16  }
 0x4ab   :  { %2074 = dma.vmem_to_hbm [thread:$0]  %s2069_s5, 512, %s4044_s8, [#allocation3], %s2812_s24, %s2812_s24, %s2813_s2  }
 0x4ac   :  { %2807 = dma.done.wait [#allocation3], 512  }
 0x4ad   :  { %2808 = vsyncadd [#allocation3], 4294966784 }
 0x4ae   :  { %2078 = vsyncpa [#allocation3], 1 }

</bundles_post_ra>
